<compile_context>
chip_gen: v7x
topology: tpu7x:2x2x1
jax: 0.10.0
libtpu: 0.0.40
codegen_flags: <defaults>
</compile_context>

<pallas_src>
import functools

import jax
import jax.numpy as jnp
import numpy as np
from jax import lax
from jax.experimental import pallas as pl
from jax.experimental.pallas import tpu as pltpu


def _fourier_cross_attn_kernel(xq_ref, xk_ref, fq_ref, fk_ref, inv_ref, o_ref,
                               *, n_heads, e_head, mq, mk, activation):
    """One batch element per grid step; all heads handled inside.

    xq_ref : (1, L, H*E)  time-major queries (lane index = head*E + channel)
    xk_ref : (1, S, H*E)  time-major keys
    fq_ref : (2*mq, L)    truncated forward DFT for q (rows = [Re | Im])
    fk_ref : (2*mk, S)    truncated forward DFT for k
    inv_ref: (L, 2*mq)    truncated inverse DFT (scale + symmetry weights folded in)
    o_ref  : (1, L, H*E)  lane-dense output
    """
    q = xq_ref[0]                       # (L, H*E)
    k = xk_ref[0]                       # (S, H*E)

    # Truncated rFFT of every head/channel at once: two row-stacked matmuls.
    qf = jnp.dot(fq_ref[...], q, preferred_element_type=jnp.float32)   # (2*mq, H*E)
    kf = jnp.dot(fk_ref[...], k, preferred_element_type=jnp.float32)   # (2*mk, H*E)

    spec_r = []
    spec_i = []
    for h in range(n_heads):            # static unroll over heads (tiny tiles)
        lo = h * e_head
        qr = qf[:mq, lo:lo + e_head]    # (mq, E)  Re rfft(q)
        qi = qf[mq:, lo:lo + e_head]    # (mq, E)  Im rfft(q)
        kr = kf[:mk, lo:lo + e_head]    # (mk, E)
        ki = kf[mk:, lo:lo + e_head]
        krt = kr.T                      # (E, mk)  small XLU transposes
        kit = ki.T

        # complex Q_ft . K_ft^T over channels (no conjugation, matching the einsum)
        s_r = (jnp.dot(qr, krt, preferred_element_type=jnp.float32)
               - jnp.dot(qi, kit, preferred_element_type=jnp.float32))
        s_i = (jnp.dot(qr, kit, preferred_element_type=jnp.float32)
               + jnp.dot(qi, krt, preferred_element_type=jnp.float32))

        if activation == 'tanh':
            # complex tanh(x+iy) = [sinh(2x) + i*sin(2y)] / [cosh(2x) + cos(2y)]
            x = jnp.clip(s_r, -12.0, 12.0)      # |x| > 12 is already fully saturated
            e2x = jnp.exp(2.0 * x)
            em2x = jnp.exp(-2.0 * x)
            inv_d = pl.reciprocal(0.5 * (e2x + em2x) + jnp.cos(2.0 * s_i),
                                  approx=True)  # EUP slot, ~free
            t_r = 0.5 * (e2x - em2x) * inv_d
            t_i = jnp.sin(2.0 * s_i) * inv_d
            o_r = (jnp.dot(t_r, kr, preferred_element_type=jnp.float32)
                   - jnp.dot(t_i, ki, preferred_element_type=jnp.float32))
            o_i = (jnp.dot(t_r, ki, preferred_element_type=jnp.float32)
                   + jnp.dot(t_i, kr, preferred_element_type=jnp.float32))
        elif activation == 'softmax':
            # softmax over |QK| (result is real); not exercised by the test below.
            mag = jnp.sqrt(s_r * s_r + s_i * s_i)
            mag = mag - jnp.max(mag, axis=-1, keepdims=True)
            p = jnp.exp(mag)
            t_r = p * pl.reciprocal(jnp.sum(p, axis=-1, keepdims=True), approx=True)
            o_r = jnp.dot(t_r, kr, preferred_element_type=jnp.float32)
            o_i = jnp.dot(t_r, ki, preferred_element_type=jnp.float32)
        else:
            raise NotImplementedError(activation)

        spec_r.append(o_r)              # (mq, E)
        spec_i.append(o_i)

    # Pack all heads back onto the 128-wide lane dim: (2*mq, H*E).
    spec = jnp.concatenate([jnp.concatenate(spec_r, axis=1),
                            jnp.concatenate(spec_i, axis=1)], axis=0)

    # Truncated irFFT back to time: single matmul, lane-dense (L, H*E) store.
    o_ref[0] = jnp.dot(inv_ref[...], spec, preferred_element_type=jnp.float32)


def _dft_matrices(L, S, mq, mk, in_channels, out_channels):
    """Truncated forward/inverse DFT operators (built once on the host)."""
    t_q = np.arange(L, dtype=np.float64)[:, None]
    j_q = np.arange(mq, dtype=np.float64)[None, :]
    ang_q = 2.0 * np.pi * t_q * j_q / L                               # (L, mq)
    fq = np.concatenate([np.cos(ang_q), -np.sin(ang_q)], axis=1).T    # (2*mq, L)

    t_k = np.arange(S, dtype=np.float64)[:, None]
    j_k = np.arange(mk, dtype=np.float64)[None, :]
    ang_k = 2.0 * np.pi * t_k * j_k / S
    fk = np.concatenate([np.cos(ang_k), -np.sin(ang_k)], axis=1).T    # (2*mk, S)

    w = np.where(np.arange(mq) == 0, 1.0, 2.0)        # conjugate-symmetry weights
    scale = 1.0 / (L * in_channels * out_channels)    # irfft 1/L + module scaling
    inv = np.concatenate([w * np.cos(ang_q), -w * np.sin(ang_q)], axis=1) * scale
    return (jnp.asarray(fq, jnp.float32), jnp.asarray(fk, jnp.float32),
            jnp.asarray(inv, jnp.float32))            # inv: (L, 2*mq)


def fourier_cross_attention_w(q, k, v, mask=None, *, in_channels, out_channels,
                              modes=16, activation='tanh'):
    """Pallas forward. q: (B, L, E, H); k, v: (B, S, E, H). Returns (out, None)."""
    del mask  # unused by the reference module
    if activation not in ('tanh', 'softmax'):
        raise NotImplementedError(activation)
    B, L, E, H = q.shape
    S = k.shape[1]
    mq = min(L // 2, modes)
    mk = min(v.shape[1] // 2, modes)   # reference uses v's length for the kv modes
    HE = H * E

    fq, fk, inv = _dft_matrices(L, S, mq, mk, in_channels, out_channels)

    # time-major, head-flattened activations: lane index = h*E + e.
    xq = jnp.transpose(q, (0, 1, 3, 2)).reshape(B, L, HE)
    xk = jnp.transpose(k, (0, 1, 3, 2)).reshape(B, S, HE)

    kernel = functools.partial(_fourier_cross_attn_kernel, n_heads=H, e_head=E,
                               mq=mq, mk=mk, activation=activation)
    out_flat = pl.pallas_call(
        kernel,
        out_shape=jax.ShapeDtypeStruct((B, L, HE), jnp.float32),
        grid=(B,),
        in_specs=[
            pl.BlockSpec((1, L, HE), lambda b: (b, 0, 0)),     # xq
            pl.BlockSpec((1, S, HE), lambda b: (b, 0, 0)),     # xk
            pl.BlockSpec((2 * mq, L), lambda b: (0, 0)),       # forward DFT (q)
            pl.BlockSpec((2 * mk, S), lambda b: (0, 0)),       # forward DFT (k)
            pl.BlockSpec((L, 2 * mq), lambda b: (0, 0)),       # inverse DFT (scaled)
        ],
        out_specs=pl.BlockSpec((1, L, HE), lambda b: (b, 0, 0)),
        compiler_params=pltpu.CompilerParams(
            dimension_semantics=("parallel",)),
    )(xq, xk, fq, fk, inv)

    out = jnp.transpose(out_flat.reshape(B, L, H, E), (0, 1, 3, 2))   # (B, L, E, H)
    return out, None


def reference_forward(q, k, v, mask=None, *, in_channels, out_channels,
                      modes=16, activation='tanh'):
    """Plain-JAX mirror of the PyTorch FourierCrossAttentionW.forward."""
    del mask
    B, L, E, H = q.shape
    xq = jnp.transpose(q, (0, 3, 2, 1))   # (B, H, E, L)
    xk = jnp.transpose(k, (0, 3, 2, 1))
    xv = jnp.transpose(v, (0, 3, 2, 1))
    mq = min(L // 2, modes)
    mk = min(xv.shape[3] // 2, modes)

    xq_ft_ = jnp.fft.rfft(xq, axis=-1)[..., :mq]
    xk_ft_ = jnp.fft.rfft(xk, axis=-1)[..., :mk]

    xqk_ft = jnp.einsum('bhex,bhey->bhxy', xq_ft_, xk_ft_,
                        precision=lax.Precision.HIGHEST)
    if activation == 'tanh':
        xqk_ft = jnp.tanh(xqk_ft)
    elif activation == 'softmax':
        xqk_ft = jax.nn.softmax(jnp.abs(xqk_ft), axis=-1).astype(xqk_ft.dtype)
    else:
        raise NotImplementedError(activation)

    xqkv_ft = jnp.einsum('bhxy,bhey->bhex', xqk_ft, xk_ft_,
                         precision=lax.Precision.HIGHEST)
    out_ft = jnp.zeros((B, H, E, L // 2 + 1), dtype=xqkv_ft.dtype)
    out_ft = out_ft.at[..., :mq].set(xqkv_ft)
    out = jnp.fft.irfft(out_ft / in_channels / out_channels, n=L, axis=-1)
    return jnp.transpose(out, (0, 3, 2, 1)), None


if __name__ == "__main__":
    # q: (B, L, E, H); k, v: (B, S, E, H).  H*E = 128 -> lane-dense output tiles.
    B, L, S, E, H = 2, 16, 16, 32, 4
    modes = 16                      # -> mq = mk = 8 modes actually kept
    in_channels = out_channels = 4

    key = jax.random.PRNGKey(0)
    kq, kk, kv = jax.random.split(key, 3)
    q = jax.random.normal(kq, (B, L, E, H), jnp.float32)
    k = jax.random.normal(kk, (B, S, E, H), jnp.float32)
    v = jax.random.normal(kv, (B, S, E, H), jnp.float32)

    out, _ = fourier_cross_attention_w(q, k, v, None, in_channels=in_channels,
                                       out_channels=out_channels, modes=modes)
    jax.block_until_ready(out)

    ref, _ = reference_forward(q, k, v, None, in_channels=in_channels,
                               out_channels=out_channels, modes=modes)
    assert out.shape == (B, L, E, H)
    err = float(jnp.max(jnp.abs(out - ref)))
    assert err < 2e-3, f"max abs error vs reference: {err}"
    print("KERNEL_OK")
</pallas_src>

<mosaic_0001>
module attributes {stable_mosaic.version = 11 : i64} {
  func.func @_fourier_cross_attn_kernel(%arg0: i32, %arg1: memref<1x16x128xf32, #tpu.memory_space<vmem>>, %arg2: memref<1x16x128xf32, #tpu.memory_space<vmem>>, %arg3: memref<16x16xf32, #tpu.memory_space<vmem>>, %arg4: memref<16x16xf32, #tpu.memory_space<vmem>>, %arg5: memref<16x16xf32, #tpu.memory_space<vmem>>, %arg6: memref<1x16x128xf32, #tpu.memory_space<vmem>>) attributes {dimension_semantics = [#tpu.dimension_semantics<parallel>], iteration_bounds = array<i64: 2>, scalar_prefetch = 0 : i64, scratch_operands = 0 : i64, tpu.core_type = #tpu.core_type<tc>, window_params = [{transform_indices = @transform_0, window_bounds = array<i64: 1, 16, 128>}, {transform_indices = @transform_1, window_bounds = array<i64: 1, 16, 128>}, {pipeline_mode = #tpu.pipeline_mode<synchronous>, transform_indices = @transform_2, window_bounds = array<i64: 16, 16>}, {pipeline_mode = #tpu.pipeline_mode<synchronous>, transform_indices = @transform_3, window_bounds = array<i64: 16, 16>}, {pipeline_mode = #tpu.pipeline_mode<synchronous>, transform_indices = @transform_4, window_bounds = array<i64: 16, 16>}, {transform_indices = @transform_5, window_bounds = array<i64: 1, 16, 128>}]} {
    %c0 = arith.constant 0 : index
    %c0_0 = arith.constant 0 : index
    %c0_1 = arith.constant 0 : index
    %0 = vector.load %arg1[%c0, %c0_0, %c0_1] : memref<1x16x128xf32, #tpu.memory_space<vmem>>, vector<1x16x128xf32>
    %1 = vector.shape_cast %0 : vector<1x16x128xf32> to vector<16x128xf32>
    %c0_2 = arith.constant 0 : index
    %c0_3 = arith.constant 0 : index
    %c0_4 = arith.constant 0 : index
    %2 = vector.load %arg2[%c0_2, %c0_3, %c0_4] : memref<1x16x128xf32, #tpu.memory_space<vmem>>, vector<1x16x128xf32>
    %3 = vector.shape_cast %2 : vector<1x16x128xf32> to vector<16x128xf32>
    %c0_5 = arith.constant 0 : index
    %c0_6 = arith.constant 0 : index
    %4 = vector.load %arg3[%c0_5, %c0_6] : memref<16x16xf32, #tpu.memory_space<vmem>>, vector<16x16xf32>
    %cst = arith.constant dense<0.000000e+00> : vector<16x128xf32>
    %5 = tpu.matmul %4, %1, %cst {dimension_numbers = #tpu.dot_dimension_numbers<[1], [0], [0], [1], [0, 0, 1, 1], [], []>} : vector<16x16xf32>, vector<16x128xf32>, vector<16x128xf32> -> vector<16x128xf32>
    %c0_7 = arith.constant 0 : index
    %c0_8 = arith.constant 0 : index
    %6 = vector.load %arg4[%c0_7, %c0_8] : memref<16x16xf32, #tpu.memory_space<vmem>>, vector<16x16xf32>
    %cst_9 = arith.constant dense<0.000000e+00> : vector<16x128xf32>
    %7 = tpu.matmul %6, %3, %cst_9 {dimension_numbers = #tpu.dot_dimension_numbers<[1], [0], [0], [1], [0, 0, 1, 1], [], []>} : vector<16x16xf32>, vector<16x128xf32>, vector<16x128xf32> -> vector<16x128xf32>
    %8 = vector.extract_strided_slice %5 {offsets = [0, 0], sizes = [8, 32], strides = [1, 1]} : vector<16x128xf32> to vector<8x32xf32>
    %9 = vector.extract_strided_slice %5 {offsets = [8, 0], sizes = [8, 32], strides = [1, 1]} : vector<16x128xf32> to vector<8x32xf32>
    %10 = vector.extract_strided_slice %7 {offsets = [0, 0], sizes = [8, 32], strides = [1, 1]} : vector<16x128xf32> to vector<8x32xf32>
    %11 = vector.extract_strided_slice %7 {offsets = [8, 0], sizes = [8, 32], strides = [1, 1]} : vector<16x128xf32> to vector<8x32xf32>
    %12 = tpu.transpose %10, [1, 0] : vector<8x32xf32> -> vector<32x8xf32>
    %13 = tpu.transpose %11, [1, 0] : vector<8x32xf32> -> vector<32x8xf32>
    %cst_10 = arith.constant dense<0.000000e+00> : vector<8x8xf32>
    %14 = tpu.matmul %8, %12, %cst_10 {dimension_numbers = #tpu.dot_dimension_numbers<[1], [0], [0], [1], [0, 0, 1, 1], [], []>} : vector<8x32xf32>, vector<32x8xf32>, vector<8x8xf32> -> vector<8x8xf32>
    %cst_11 = arith.constant dense<0.000000e+00> : vector<8x8xf32>
    %15 = tpu.matmul %9, %13, %cst_11 {dimension_numbers = #tpu.dot_dimension_numbers<[1], [0], [0], [1], [0, 0, 1, 1], [], []>} : vector<8x32xf32>, vector<32x8xf32>, vector<8x8xf32> -> vector<8x8xf32>
    %16 = arith.subf %14, %15 : vector<8x8xf32>
    %cst_12 = arith.constant dense<0.000000e+00> : vector<8x8xf32>
    %17 = tpu.matmul %8, %13, %cst_12 {dimension_numbers = #tpu.dot_dimension_numbers<[1], [0], [0], [1], [0, 0, 1, 1], [], []>} : vector<8x32xf32>, vector<32x8xf32>, vector<8x8xf32> -> vector<8x8xf32>
    %cst_13 = arith.constant dense<0.000000e+00> : vector<8x8xf32>
    %18 = tpu.matmul %9, %12, %cst_13 {dimension_numbers = #tpu.dot_dimension_numbers<[1], [0], [0], [1], [0, 0, 1, 1], [], []>} : vector<8x32xf32>, vector<32x8xf32>, vector<8x8xf32> -> vector<8x8xf32>
    %19 = arith.addf %17, %18 : vector<8x8xf32>
    %cst_14 = arith.constant -1.200000e+01 : f32
    %cst_15 = arith.constant 1.200000e+01 : f32
    %20 = vector.broadcast %cst_14 : f32 to vector<8x8xf32>
    %21 = arith.maximumf %20, %16 : vector<8x8xf32>
    %22 = vector.broadcast %cst_15 : f32 to vector<8x8xf32>
    %23 = arith.minimumf %22, %21 : vector<8x8xf32>
    %cst_16 = arith.constant 2.000000e+00 : f32
    %24 = vector.broadcast %cst_16 : f32 to vector<8x8xf32>
    %25 = arith.mulf %24, %23 : vector<8x8xf32>
    %26 = math.exp %25 : vector<8x8xf32>
    %cst_17 = arith.constant -2.000000e+00 : f32
    %27 = vector.broadcast %cst_17 : f32 to vector<8x8xf32>
    %28 = arith.mulf %27, %23 : vector<8x8xf32>
    %29 = math.exp %28 : vector<8x8xf32>
    %30 = arith.addf %26, %29 : vector<8x8xf32>
    %cst_18 = arith.constant 5.000000e-01 : f32
    %31 = vector.broadcast %cst_18 : f32 to vector<8x8xf32>
    %32 = arith.mulf %31, %30 : vector<8x8xf32>
    %cst_19 = arith.constant 2.000000e+00 : f32
    %33 = vector.broadcast %cst_19 : f32 to vector<8x8xf32>
    %34 = arith.mulf %33, %19 : vector<8x8xf32>
    %35 = math.cos %34 : vector<8x8xf32>
    %36 = arith.addf %32, %35 : vector<8x8xf32>
    %37 = tpu.reciprocal %36 {approx = true} : vector<8x8xf32> -> vector<8x8xf32>
    %38 = arith.subf %26, %29 : vector<8x8xf32>
    %cst_20 = arith.constant 5.000000e-01 : f32
    %39 = vector.broadcast %cst_20 : f32 to vector<8x8xf32>
    %40 = arith.mulf %39, %38 : vector<8x8xf32>
    %41 = arith.mulf %40, %37 : vector<8x8xf32>
    %cst_21 = arith.constant 2.000000e+00 : f32
    %42 = vector.broadcast %cst_21 : f32 to vector<8x8xf32>
    %43 = arith.mulf %42, %19 : vector<8x8xf32>
    %44 = math.sin %43 : vector<8x8xf32>
    %45 = arith.mulf %44, %37 : vector<8x8xf32>
    %cst_22 = arith.constant dense<0.000000e+00> : vector<8x32xf32>
    %46 = tpu.matmul %41, %10, %cst_22 {dimension_numbers = #tpu.dot_dimension_numbers<[1], [0], [0], [1], [0, 0, 1, 1], [], []>} : vector<8x8xf32>, vector<8x32xf32>, vector<8x32xf32> -> vector<8x32xf32>
    %cst_23 = arith.constant dense<0.000000e+00> : vector<8x32xf32>
    %47 = tpu.matmul %45, %11, %cst_23 {dimension_numbers = #tpu.dot_dimension_numbers<[1], [0], [0], [1], [0, 0, 1, 1], [], []>} : vector<8x8xf32>, vector<8x32xf32>, vector<8x32xf32> -> vector<8x32xf32>
    %48 = arith.subf %46, %47 : vector<8x32xf32>
    %cst_24 = arith.constant dense<0.000000e+00> : vector<8x32xf32>
    %49 = tpu.matmul %41, %11, %cst_24 {dimension_numbers = #tpu.dot_dimension_numbers<[1], [0], [0], [1], [0, 0, 1, 1], [], []>} : vector<8x8xf32>, vector<8x32xf32>, vector<8x32xf32> -> vector<8x32xf32>
    %cst_25 = arith.constant dense<0.000000e+00> : vector<8x32xf32>
    %50 = tpu.matmul %45, %10, %cst_25 {dimension_numbers = #tpu.dot_dimension_numbers<[1], [0], [0], [1], [0, 0, 1, 1], [], []>} : vector<8x8xf32>, vector<8x32xf32>, vector<8x32xf32> -> vector<8x32xf32>
    %51 = arith.addf %49, %50 : vector<8x32xf32>
    %52 = vector.extract_strided_slice %5 {offsets = [0, 32], sizes = [8, 32], strides = [1, 1]} : vector<16x128xf32> to vector<8x32xf32>
    %53 = vector.extract_strided_slice %5 {offsets = [8, 32], sizes = [8, 32], strides = [1, 1]} : vector<16x128xf32> to vector<8x32xf32>
    %54 = vector.extract_strided_slice %7 {offsets = [0, 32], sizes = [8, 32], strides = [1, 1]} : vector<16x128xf32> to vector<8x32xf32>
    %55 = vector.extract_strided_slice %7 {offsets = [8, 32], sizes = [8, 32], strides = [1, 1]} : vector<16x128xf32> to vector<8x32xf32>
    %56 = tpu.transpose %54, [1, 0] : vector<8x32xf32> -> vector<32x8xf32>
    %57 = tpu.transpose %55, [1, 0] : vector<8x32xf32> -> vector<32x8xf32>
    %cst_26 = arith.constant dense<0.000000e+00> : vector<8x8xf32>
    %58 = tpu.matmul %52, %56, %cst_26 {dimension_numbers = #tpu.dot_dimension_numbers<[1], [0], [0], [1], [0, 0, 1, 1], [], []>} : vector<8x32xf32>, vector<32x8xf32>, vector<8x8xf32> -> vector<8x8xf32>
    %cst_27 = arith.constant dense<0.000000e+00> : vector<8x8xf32>
    %59 = tpu.matmul %53, %57, %cst_27 {dimension_numbers = #tpu.dot_dimension_numbers<[1], [0], [0], [1], [0, 0, 1, 1], [], []>} : vector<8x32xf32>, vector<32x8xf32>, vector<8x8xf32> -> vector<8x8xf32>
    %60 = arith.subf %58, %59 : vector<8x8xf32>
    %cst_28 = arith.constant dense<0.000000e+00> : vector<8x8xf32>
    %61 = tpu.matmul %52, %57, %cst_28 {dimension_numbers = #tpu.dot_dimension_numbers<[1], [0], [0], [1], [0, 0, 1, 1], [], []>} : vector<8x32xf32>, vector<32x8xf32>, vector<8x8xf32> -> vector<8x8xf32>
    %cst_29 = arith.constant dense<0.000000e+00> : vector<8x8xf32>
    %62 = tpu.matmul %53, %56, %cst_29 {dimension_numbers = #tpu.dot_dimension_numbers<[1], [0], [0], [1], [0, 0, 1, 1], [], []>} : vector<8x32xf32>, vector<32x8xf32>, vector<8x8xf32> -> vector<8x8xf32>
    %63 = arith.addf %61, %62 : vector<8x8xf32>
    %cst_30 = arith.constant -1.200000e+01 : f32
    %cst_31 = arith.constant 1.200000e+01 : f32
    %64 = vector.broadcast %cst_30 : f32 to vector<8x8xf32>
    %65 = arith.maximumf %64, %60 : vector<8x8xf32>
    %66 = vector.broadcast %cst_31 : f32 to vector<8x8xf32>
    %67 = arith.minimumf %66, %65 : vector<8x8xf32>
    %cst_32 = arith.constant 2.000000e+00 : f32
    %68 = vector.broadcast %cst_32 : f32 to vector<8x8xf32>
    %69 = arith.mulf %68, %67 : vector<8x8xf32>
    %70 = math.exp %69 : vector<8x8xf32>
    %cst_33 = arith.constant -2.000000e+00 : f32
    %71 = vector.broadcast %cst_33 : f32 to vector<8x8xf32>
    %72 = arith.mulf %71, %67 : vector<8x8xf32>
    %73 = math.exp %72 : vector<8x8xf32>
    %74 = arith.addf %70, %73 : vector<8x8xf32>
    %cst_34 = arith.constant 5.000000e-01 : f32
    %75 = vector.broadcast %cst_34 : f32 to vector<8x8xf32>
    %76 = arith.mulf %75, %74 : vector<8x8xf32>
    %cst_35 = arith.constant 2.000000e+00 : f32
    %77 = vector.broadcast %cst_35 : f32 to vector<8x8xf32>
    %78 = arith.mulf %77, %63 : vector<8x8xf32>
    %79 = math.cos %78 : vector<8x8xf32>
    %80 = arith.addf %76, %79 : vector<8x8xf32>
    %81 = tpu.reciprocal %80 {approx = true} : vector<8x8xf32> -> vector<8x8xf32>
    %82 = arith.subf %70, %73 : vector<8x8xf32>
    %cst_36 = arith.constant 5.000000e-01 : f32
    %83 = vector.broadcast %cst_36 : f32 to vector<8x8xf32>
    %84 = arith.mulf %83, %82 : vector<8x8xf32>
    %85 = arith.mulf %84, %81 : vector<8x8xf32>
    %cst_37 = arith.constant 2.000000e+00 : f32
    %86 = vector.broadcast %cst_37 : f32 to vector<8x8xf32>
    %87 = arith.mulf %86, %63 : vector<8x8xf32>
    %88 = math.sin %87 : vector<8x8xf32>
    %89 = arith.mulf %88, %81 : vector<8x8xf32>
    %cst_38 = arith.constant dense<0.000000e+00> : vector<8x32xf32>
    %90 = tpu.matmul %85, %54, %cst_38 {dimension_numbers = #tpu.dot_dimension_numbers<[1], [0], [0], [1], [0, 0, 1, 1], [], []>} : vector<8x8xf32>, vector<8x32xf32>, vector<8x32xf32> -> vector<8x32xf32>
    %cst_39 = arith.constant dense<0.000000e+00> : vector<8x32xf32>
    %91 = tpu.matmul %89, %55, %cst_39 {dimension_numbers = #tpu.dot_dimension_numbers<[1], [0], [0], [1], [0, 0, 1, 1], [], []>} : vector<8x8xf32>, vector<8x32xf32>, vector<8x32xf32> -> vector<8x32xf32>
    %92 = arith.subf %90, %91 : vector<8x32xf32>
    %cst_40 = arith.constant dense<0.000000e+00> : vector<8x32xf32>
    %93 = tpu.matmul %85, %55, %cst_40 {dimension_numbers = #tpu.dot_dimension_numbers<[1], [0], [0], [1], [0, 0, 1, 1], [], []>} : vector<8x8xf32>, vector<8x32xf32>, vector<8x32xf32> -> vector<8x32xf32>
    %cst_41 = arith.constant dense<0.000000e+00> : vector<8x32xf32>
    %94 = tpu.matmul %89, %54, %cst_41 {dimension_numbers = #tpu.dot_dimension_numbers<[1], [0], [0], [1], [0, 0, 1, 1], [], []>} : vector<8x8xf32>, vector<8x32xf32>, vector<8x32xf32> -> vector<8x32xf32>
    %95 = arith.addf %93, %94 : vector<8x32xf32>
    %96 = vector.extract_strided_slice %5 {offsets = [0, 64], sizes = [8, 32], strides = [1, 1]} : vector<16x128xf32> to vector<8x32xf32>
    %97 = vector.extract_strided_slice %5 {offsets = [8, 64], sizes = [8, 32], strides = [1, 1]} : vector<16x128xf32> to vector<8x32xf32>
    %98 = vector.extract_strided_slice %7 {offsets = [0, 64], sizes = [8, 32], strides = [1, 1]} : vector<16x128xf32> to vector<8x32xf32>
    %99 = vector.extract_strided_slice %7 {offsets = [8, 64], sizes = [8, 32], strides = [1, 1]} : vector<16x128xf32> to vector<8x32xf32>
    %100 = tpu.transpose %98, [1, 0] : vector<8x32xf32> -> vector<32x8xf32>
    %101 = tpu.transpose %99, [1, 0] : vector<8x32xf32> -> vector<32x8xf32>
    %cst_42 = arith.constant dense<0.000000e+00> : vector<8x8xf32>
    %102 = tpu.matmul %96, %100, %cst_42 {dimension_numbers = #tpu.dot_dimension_numbers<[1], [0], [0], [1], [0, 0, 1, 1], [], []>} : vector<8x32xf32>, vector<32x8xf32>, vector<8x8xf32> -> vector<8x8xf32>
    %cst_43 = arith.constant dense<0.000000e+00> : vector<8x8xf32>
    %103 = tpu.matmul %97, %101, %cst_43 {dimension_numbers = #tpu.dot_dimension_numbers<[1], [0], [0], [1], [0, 0, 1, 1], [], []>} : vector<8x32xf32>, vector<32x8xf32>, vector<8x8xf32> -> vector<8x8xf32>
    %104 = arith.subf %102, %103 : vector<8x8xf32>
    %cst_44 = arith.constant dense<0.000000e+00> : vector<8x8xf32>
    %105 = tpu.matmul %96, %101, %cst_44 {dimension_numbers = #tpu.dot_dimension_numbers<[1], [0], [0], [1], [0, 0, 1, 1], [], []>} : vector<8x32xf32>, vector<32x8xf32>, vector<8x8xf32> -> vector<8x8xf32>
    %cst_45 = arith.constant dense<0.000000e+00> : vector<8x8xf32>
    %106 = tpu.matmul %97, %100, %cst_45 {dimension_numbers = #tpu.dot_dimension_numbers<[1], [0], [0], [1], [0, 0, 1, 1], [], []>} : vector<8x32xf32>, vector<32x8xf32>, vector<8x8xf32> -> vector<8x8xf32>
    %107 = arith.addf %105, %106 : vector<8x8xf32>
    %cst_46 = arith.constant -1.200000e+01 : f32
    %cst_47 = arith.constant 1.200000e+01 : f32
    %108 = vector.broadcast %cst_46 : f32 to vector<8x8xf32>
    %109 = arith.maximumf %108, %104 : vector<8x8xf32>
    %110 = vector.broadcast %cst_47 : f32 to vector<8x8xf32>
    %111 = arith.minimumf %110, %109 : vector<8x8xf32>
    %cst_48 = arith.constant 2.000000e+00 : f32
    %112 = vector.broadcast %cst_48 : f32 to vector<8x8xf32>
    %113 = arith.mulf %112, %111 : vector<8x8xf32>
    %114 = math.exp %113 : vector<8x8xf32>
    %cst_49 = arith.constant -2.000000e+00 : f32
    %115 = vector.broadcast %cst_49 : f32 to vector<8x8xf32>
    %116 = arith.mulf %115, %111 : vector<8x8xf32>
    %117 = math.exp %116 : vector<8x8xf32>
    %118 = arith.addf %114, %117 : vector<8x8xf32>
    %cst_50 = arith.constant 5.000000e-01 : f32
    %119 = vector.broadcast %cst_50 : f32 to vector<8x8xf32>
    %120 = arith.mulf %119, %118 : vector<8x8xf32>
    %cst_51 = arith.constant 2.000000e+00 : f32
    %121 = vector.broadcast %cst_51 : f32 to vector<8x8xf32>
    %122 = arith.mulf %121, %107 : vector<8x8xf32>
    %123 = math.cos %122 : vector<8x8xf32>
    %124 = arith.addf %120, %123 : vector<8x8xf32>
    %125 = tpu.reciprocal %124 {approx = true} : vector<8x8xf32> -> vector<8x8xf32>
    %126 = arith.subf %114, %117 : vector<8x8xf32>
    %cst_52 = arith.constant 5.000000e-01 : f32
    %127 = vector.broadcast %cst_52 : f32 to vector<8x8xf32>
    %128 = arith.mulf %127, %126 : vector<8x8xf32>
    %129 = arith.mulf %128, %125 : vector<8x8xf32>
    %cst_53 = arith.constant 2.000000e+00 : f32
    %130 = vector.broadcast %cst_53 : f32 to vector<8x8xf32>
    %131 = arith.mulf %130, %107 : vector<8x8xf32>
    %132 = math.sin %131 : vector<8x8xf32>
    %133 = arith.mulf %132, %125 : vector<8x8xf32>
    %cst_54 = arith.constant dense<0.000000e+00> : vector<8x32xf32>
    %134 = tpu.matmul %129, %98, %cst_54 {dimension_numbers = #tpu.dot_dimension_numbers<[1], [0], [0], [1], [0, 0, 1, 1], [], []>} : vector<8x8xf32>, vector<8x32xf32>, vector<8x32xf32> -> vector<8x32xf32>
    %cst_55 = arith.constant dense<0.000000e+00> : vector<8x32xf32>
    %135 = tpu.matmul %133, %99, %cst_55 {dimension_numbers = #tpu.dot_dimension_numbers<[1], [0], [0], [1], [0, 0, 1, 1], [], []>} : vector<8x8xf32>, vector<8x32xf32>, vector<8x32xf32> -> vector<8x32xf32>
    %136 = arith.subf %134, %135 : vector<8x32xf32>
    %cst_56 = arith.constant dense<0.000000e+00> : vector<8x32xf32>
    %137 = tpu.matmul %129, %99, %cst_56 {dimension_numbers = #tpu.dot_dimension_numbers<[1], [0], [0], [1], [0, 0, 1, 1], [], []>} : vector<8x8xf32>, vector<8x32xf32>, vector<8x32xf32> -> vector<8x32xf32>
    %cst_57 = arith.constant dense<0.000000e+00> : vector<8x32xf32>
    %138 = tpu.matmul %133, %98, %cst_57 {dimension_numbers = #tpu.dot_dimension_numbers<[1], [0], [0], [1], [0, 0, 1, 1], [], []>} : vector<8x8xf32>, vector<8x32xf32>, vector<8x32xf32> -> vector<8x32xf32>
    %139 = arith.addf %137, %138 : vector<8x32xf32>
    %140 = vector.extract_strided_slice %5 {offsets = [0, 96], sizes = [8, 32], strides = [1, 1]} : vector<16x128xf32> to vector<8x32xf32>
    %141 = vector.extract_strided_slice %5 {offsets = [8, 96], sizes = [8, 32], strides = [1, 1]} : vector<16x128xf32> to vector<8x32xf32>
    %142 = vector.extract_strided_slice %7 {offsets = [0, 96], sizes = [8, 32], strides = [1, 1]} : vector<16x128xf32> to vector<8x32xf32>
    %143 = vector.extract_strided_slice %7 {offsets = [8, 96], sizes = [8, 32], strides = [1, 1]} : vector<16x128xf32> to vector<8x32xf32>
    %144 = tpu.transpose %142, [1, 0] : vector<8x32xf32> -> vector<32x8xf32>
    %145 = tpu.transpose %143, [1, 0] : vector<8x32xf32> -> vector<32x8xf32>
    %cst_58 = arith.constant dense<0.000000e+00> : vector<8x8xf32>
    %146 = tpu.matmul %140, %144, %cst_58 {dimension_numbers = #tpu.dot_dimension_numbers<[1], [0], [0], [1], [0, 0, 1, 1], [], []>} : vector<8x32xf32>, vector<32x8xf32>, vector<8x8xf32> -> vector<8x8xf32>
    %cst_59 = arith.constant dense<0.000000e+00> : vector<8x8xf32>
    %147 = tpu.matmul %141, %145, %cst_59 {dimension_numbers = #tpu.dot_dimension_numbers<[1], [0], [0], [1], [0, 0, 1, 1], [], []>} : vector<8x32xf32>, vector<32x8xf32>, vector<8x8xf32> -> vector<8x8xf32>
    %148 = arith.subf %146, %147 : vector<8x8xf32>
    %cst_60 = arith.constant dense<0.000000e+00> : vector<8x8xf32>
    %149 = tpu.matmul %140, %145, %cst_60 {dimension_numbers = #tpu.dot_dimension_numbers<[1], [0], [0], [1], [0, 0, 1, 1], [], []>} : vector<8x32xf32>, vector<32x8xf32>, vector<8x8xf32> -> vector<8x8xf32>
    %cst_61 = arith.constant dense<0.000000e+00> : vector<8x8xf32>
    %150 = tpu.matmul %141, %144, %cst_61 {dimension_numbers = #tpu.dot_dimension_numbers<[1], [0], [0], [1], [0, 0, 1, 1], [], []>} : vector<8x32xf32>, vector<32x8xf32>, vector<8x8xf32> -> vector<8x8xf32>
    %151 = arith.addf %149, %150 : vector<8x8xf32>
    %cst_62 = arith.constant -1.200000e+01 : f32
    %cst_63 = arith.constant 1.200000e+01 : f32
    %152 = vector.broadcast %cst_62 : f32 to vector<8x8xf32>
    %153 = arith.maximumf %152, %148 : vector<8x8xf32>
    %154 = vector.broadcast %cst_63 : f32 to vector<8x8xf32>
    %155 = arith.minimumf %154, %153 : vector<8x8xf32>
    %cst_64 = arith.constant 2.000000e+00 : f32
    %156 = vector.broadcast %cst_64 : f32 to vector<8x8xf32>
    %157 = arith.mulf %156, %155 : vector<8x8xf32>
    %158 = math.exp %157 : vector<8x8xf32>
    %cst_65 = arith.constant -2.000000e+00 : f32
    %159 = vector.broadcast %cst_65 : f32 to vector<8x8xf32>
    %160 = arith.mulf %159, %155 : vector<8x8xf32>
    %161 = math.exp %160 : vector<8x8xf32>
    %162 = arith.addf %158, %161 : vector<8x8xf32>
    %cst_66 = arith.constant 5.000000e-01 : f32
    %163 = vector.broadcast %cst_66 : f32 to vector<8x8xf32>
    %164 = arith.mulf %163, %162 : vector<8x8xf32>
    %cst_67 = arith.constant 2.000000e+00 : f32
    %165 = vector.broadcast %cst_67 : f32 to vector<8x8xf32>
    %166 = arith.mulf %165, %151 : vector<8x8xf32>
    %167 = math.cos %166 : vector<8x8xf32>
    %168 = arith.addf %164, %167 : vector<8x8xf32>
    %169 = tpu.reciprocal %168 {approx = true} : vector<8x8xf32> -> vector<8x8xf32>
    %170 = arith.subf %158, %161 : vector<8x8xf32>
    %cst_68 = arith.constant 5.000000e-01 : f32
    %171 = vector.broadcast %cst_68 : f32 to vector<8x8xf32>
    %172 = arith.mulf %171, %170 : vector<8x8xf32>
    %173 = arith.mulf %172, %169 : vector<8x8xf32>
    %cst_69 = arith.constant 2.000000e+00 : f32
    %174 = vector.broadcast %cst_69 : f32 to vector<8x8xf32>
    %175 = arith.mulf %174, %151 : vector<8x8xf32>
    %176 = math.sin %175 : vector<8x8xf32>
    %177 = arith.mulf %176, %169 : vector<8x8xf32>
    %cst_70 = arith.constant dense<0.000000e+00> : vector<8x32xf32>
    %178 = tpu.matmul %173, %142, %cst_70 {dimension_numbers = #tpu.dot_dimension_numbers<[1], [0], [0], [1], [0, 0, 1, 1], [], []>} : vector<8x8xf32>, vector<8x32xf32>, vector<8x32xf32> -> vector<8x32xf32>
    %cst_71 = arith.constant dense<0.000000e+00> : vector<8x32xf32>
    %179 = tpu.matmul %177, %143, %cst_71 {dimension_numbers = #tpu.dot_dimension_numbers<[1], [0], [0], [1], [0, 0, 1, 1], [], []>} : vector<8x8xf32>, vector<8x32xf32>, vector<8x32xf32> -> vector<8x32xf32>
    %180 = arith.subf %178, %179 : vector<8x32xf32>
    %cst_72 = arith.constant dense<0.000000e+00> : vector<8x32xf32>
    %181 = tpu.matmul %173, %143, %cst_72 {dimension_numbers = #tpu.dot_dimension_numbers<[1], [0], [0], [1], [0, 0, 1, 1], [], []>} : vector<8x8xf32>, vector<8x32xf32>, vector<8x32xf32> -> vector<8x32xf32>
    %cst_73 = arith.constant dense<0.000000e+00> : vector<8x32xf32>
    %182 = tpu.matmul %177, %142, %cst_73 {dimension_numbers = #tpu.dot_dimension_numbers<[1], [0], [0], [1], [0, 0, 1, 1], [], []>} : vector<8x8xf32>, vector<8x32xf32>, vector<8x32xf32> -> vector<8x32xf32>
    %183 = arith.addf %181, %182 : vector<8x32xf32>
    %184 = tpu.concatenate %48, %92, %136, %180 in 1 : vector<8x32xf32>, vector<8x32xf32>, vector<8x32xf32>, vector<8x32xf32> -> vector<8x128xf32>
    %185 = tpu.concatenate %51, %95, %139, %183 in 1 : vector<8x32xf32>, vector<8x32xf32>, vector<8x32xf32>, vector<8x32xf32> -> vector<8x128xf32>
    %186 = tpu.concatenate %184, %185 in 0 : vector<8x128xf32>, vector<8x128xf32> -> vector<16x128xf32>
    %c0_74 = arith.constant 0 : index
    %c0_75 = arith.constant 0 : index
    %187 = vector.load %arg5[%c0_74, %c0_75] : memref<16x16xf32, #tpu.memory_space<vmem>>, vector<16x16xf32>
    %cst_76 = arith.constant dense<0.000000e+00> : vector<16x128xf32>
    %188 = tpu.matmul %187, %186, %cst_76 {dimension_numbers = #tpu.dot_dimension_numbers<[1], [0], [0], [1], [0, 0, 1, 1], [], []>} : vector<16x16xf32>, vector<16x128xf32>, vector<16x128xf32> -> vector<16x128xf32>
    %c0_77 = arith.constant 0 : index
    %c0_78 = arith.constant 0 : index
    %c0_79 = arith.constant 0 : index
    %189 = vector.load %arg6[%c0_77, %c0_78, %c0_79] : memref<1x16x128xf32, #tpu.memory_space<vmem>>, vector<1x16x128xf32>
    %190 = vector.shape_cast %189 : vector<1x16x128xf32> to vector<16x128xf32>
    %191 = vector.shape_cast %188 : vector<16x128xf32> to vector<1x16x128xf32>
    tpu.vector_store %arg6[%c0_77, %c0_78, %c0_79], %191 {strides = array<i32>} : memref<1x16x128xf32, #tpu.memory_space<vmem>>, vector<1x16x128xf32>,
    return
  }
  func.func @transform_0(%arg0: i32) -> (i32, i32, i32) {
    %c0_i32 = arith.constant 0 : i32
    %c0_i32_0 = arith.constant 0 : i32
    %c0_i32_1 = arith.constant 0 : i32
    return %arg0, %c0_i32, %c0_i32_0 : i32, i32, i32
  }
  func.func @transform_1(%arg0: i32) -> (i32, i32, i32) {
    %c0_i32 = arith.constant 0 : i32
    %c0_i32_0 = arith.constant 0 : i32
    %c0_i32_1 = arith.constant 0 : i32
    return %arg0, %c0_i32, %c0_i32_0 : i32, i32, i32
  }
  func.func @transform_2(%arg0: i32) -> (i32, i32) {
    %c0_i32 = arith.constant 0 : i32
    %c0_i32_0 = arith.constant 0 : i32
    %c0_i32_1 = arith.constant 0 : i32
    return %c0_i32, %c0_i32_0 : i32, i32
  }
  func.func @transform_3(%arg0: i32) -> (i32, i32) {
    %c0_i32 = arith.constant 0 : i32
    %c0_i32_0 = arith.constant 0 : i32
    %c0_i32_1 = arith.constant 0 : i32
    return %c0_i32, %c0_i32_0 : i32, i32
  }
  func.func @transform_4(%arg0: i32) -> (i32, i32) {
    %c0_i32 = arith.constant 0 : i32
    %c0_i32_0 = arith.constant 0 : i32
    %c0_i32_1 = arith.constant 0 : i32
    return %c0_i32, %c0_i32_0 : i32, i32
  }
  func.func @transform_5(%arg0: i32) -> (i32, i32, i32) {
    %c0_i32 = arith.constant 0 : i32
    %c0_i32_0 = arith.constant 0 : i32
    %c0_i32_1 = arith.constant 0 : i32
    return %arg0, %c0_i32, %c0_i32_0 : i32, i32, i32
  }
}

</mosaic_0001>

<bundles_post_ra>
// kernel: tpu_custom_call.1
= control target key start
LH: loop header
LB: loop body
LE: loop exit
PB: predicated region body
PF: predicated region fallthrough
CT: control target
= control target key end

     0   :  { %s5525_s0 = inlined_call_operand.hbm [shape: f32[2,16,128], index: 0, kind: input, shape index: {}]   ;;  %s5526_s1 = inlined_call_operand.hbm [shape: f32[2,16,128], index: 1, kind: input, shape index: {}]   ;;  %s5527_s2 = inlined_call_operand.hbm [shape: f32[16,16], index: 2, kind: input, shape index: {}]   ;;  %s5528_s3 = inlined_call_operand.hbm [shape: f32[16,16], index: 3, kind: input, shape index: {}]   ;;  %s5529_s4 = inlined_call_operand.hbm [shape: f32[16,16], index: 4, kind: input, shape index: {}]   ;;  %s5530_s5 = inlined_call_operand.hbm [shape: f32[2,16,128], index: 5, kind: output, shape index: {}]  }
   0x1   :  { %5538 = sst [smem:[#allocation17_spill]] %s5525_s0 }
   0x2   :  { %5539 = sst [smem:[#allocation18_spill]] %s5527_s2 }
   0x3   :  { %5540 = sst [smem:[#allocation19_spill]] %s5528_s3 }
   0x4   :  { %5541 = sst [smem:[#allocation20_spill]] %s5529_s4 }
   0x5   :  { %10 = vsyncpa [#allocation3], 0 }
   0x6   :  { %12 = vsyncpa [#allocation3 + $0x1], 0 }
   0x7   :  { %13 = vsyncpa [#allocation6], 0 }
   0x8   :  { %15 = vsyncpa [#allocation6 + $0x1], 0 }
   0x9   :  { %16 = vsyncpa [#allocation9], 0 }
   0xa   :  { %17 = vsyncpa [#allocation4], 0 }
   0xb   :  { %19 = vsyncpa [#allocation4 + $0x1], 0  ;;  %s4833_s18 = smov 0   ;;  %s4835_s19 = smov 0  }
   0xc   :  { %s4837_s20 = smov 0   ;;  %s4839_s21 = smov 0  }
   0xd LB: > { %s4854_s22 = sadd.s32 4294967295, %s4780_s21   ;;  %s3988_s23 = sadd.s32 4294967294, %s4780_s21   ;;  %s4780_s21 = sphi %s4839_s21, %s5567_s21   ;;  %s4776_s20 = sphi %s4837_s20, %s5566_s20   ;;  %s4772_s19 = sphi %s4835_s19, %s5565_s19   ;;  %s4768_s18 = sphi %s4833_s18, %s5564_s18  }
   0xe   : > { %p45_p0 = scmp.ne.s32.totalorder %s4772_s19, %s4768_s18  ;;  %p5531_p1 = scmp.eq.s32.totalorder %s4854_s22, 0 }
   0xf   : > { %p164_p3 = scmp.eq.s32.totalorder %s3988_s23, 1  ;;  %p3989_p5 = scmp.ge.s32.totalorder %s4780_s21, 1 }
  0x10   : > { %p4863_p4 = por %p5531_p1, %p45_p0  ;;  %p171_p7 = scmp.lt.s32.totalorder %s4780_s21, 3 }
  0x11   : > { %p4868_p6 = por %p164_p3, %p45_p0  ;;  %s4782_s27 = smov [#allocation7]  }
  0x12   : > { %s5542_s24 = scalar_select %p4863_p4, 1, 0 }
  0x13   : > { %s5543_s25 = scalar_select %p4868_p6, 1, 0 }
  0x14   : > { %p4873_p8 = pnand %p3989_p5, %p171_p7  ;;  %s183_s28 = sshll.u32 %s4782_s27, 4  ;;  %s4877_s28 = int_to_ptr.vmem [resolvable:$true] %s183_s28 }
  0x15   : > { %s4783_s30 = smov [#allocation8]   ;;  %s4784_s7 = smov [#allocation10]  }
  0x16   : > { %s5544_s26 = scalar_select %p4873_p8, 1, 0 }
  0x17   : > { %p4424_p9 = pneg %p4873_p8  ;;  %s196_s6 = sshll.u32 %s4783_s30, 4  ;;  %s4888_s6 = int_to_ptr.vmem [resolvable:$true] %s196_s6 }
  0x18   : > { %s4890_s8 = sshll.u32 %s4784_s7, 4  ;;  %s5546_s2 = sld [smem:[#allocation18_spill]]  ;;  %s210_s8 = int_to_ptr.vmem [resolvable:$true] %s4890_s8 }
  0x19   : > { %p4884_p11 = pnand %p4424_p9, %p5531_p1 }
  0x1b   : > { %p4900_p13 = pneg %p4884_p11 }
  0x1e   : > { %s4558_s11 = scalar_lea.hbm %s5546_s2, 256 }
  0x1f   : > { %p4559_p12 = scmp.ne.s32.totalorder %s5546_s2, %s4558_s11  ;;  %p4565_p5 = scmp.lt.u32.totalorder %s4558_s11, %s5546_s2 }
  0x21   : > { %p4561_p0 = pnand %p4900_p13, %p4559_p12 }
  0x23   : > { %p4562_p3 = pneg %p4561_p0 }
  0x25   : > { %p4567_p7 = pnand %p4565_p5, %p4562_p3 }
  0x27   : > { %4570 = shalt.err (!%p4567_p7)
}
  0x28   : > { %s4571_s17 = scalar_lea.vmem %s4877_s28, 256  ;;  %p4579_p2 = scmp.lt.s32.totalorder %s4877_s28, %s4877_s28 }
  0x29   : > { %p4572_p9 = scmp.ne.s32.totalorder %s4877_s28, %s4571_s17  ;;  %p4580_p6 = scmp.lt.s32.totalorder %s4571_s17, %s4571_s17 }
  0x2b   : > { %p4574_p10 = pnand %p4572_p9, %p4900_p13  ;;  %p4581_p12 = por %p4580_p6, %p4579_p2 }
  0x2d   : > { %p4575_p1 = pneg %p4574_p10 }
  0x2f   : > { %p4582_p0 = pnand %p4581_p12, %p4575_p1 }
  0x31   : > { %4585 = shalt.err (!%p4582_p0)
}
  0x32   : > { %s5534_s23 = smov 128   ;;  %s5536_s27 = smov 8  }
  0x33   : > { %4427 = dma.hbm_to_vmem [thread:$0]  (!%p4884_p11), %s5546_s2, 256, %s4877_s28, [#allocation6], %s5534_s23, %s5534_s23, %s5536_s27  }
  0x34   : > { %s5548_s3 = sld [smem:[#allocation19_spill]] }
  0x3a   : > { %s4586_s11 = scalar_lea.hbm %s5548_s3, 256 }
  0x3b   : > { %p4587_p1 = scmp.ne.s32.totalorder %s5548_s3, %s4586_s11  ;;  %p4593_p10 = scmp.lt.u32.totalorder %s4586_s11, %s5548_s3 }
  0x3d   : > { %p4589_p2 = pnand %p4587_p1, %p4900_p13 }
  0x3f   : > { %p4590_p6 = pneg %p4589_p2 }
  0x41   : > { %p4595_p3 = pnand %p4593_p10, %p4590_p6 }
  0x43   : > { %4598 = shalt.err (!%p4595_p3)
}
  0x44   : > { %s4599_s28 = scalar_lea.vmem %s4888_s6, 256  ;;  %p4607_p12 = scmp.lt.s32.totalorder %s4888_s6, %s4888_s6 }
  0x45   : > { %p4600_p5 = scmp.ne.s32.totalorder %s4888_s6, %s4599_s28  ;;  %p4608_p0 = scmp.lt.s32.totalorder %s4599_s28, %s4599_s28 }
  0x47   : > { %p4602_p7 = pnand %p4600_p5, %p4900_p13  ;;  %p4609_p1 = por %p4608_p0, %p4607_p12 }
  0x49   : > { %p4603_p9 = pneg %p4602_p7 }
  0x4b   : > { %p4610_p2 = pnand %p4609_p1, %p4603_p9 }
  0x4d   : > { %4613 = shalt.err (!%p4610_p2)
}
  0x4e   : > { %4430 = dma.hbm_to_vmem [thread:$0]  (!%p4884_p11), %s5548_s3, 256, %s4888_s6, [#allocation9], %s5534_s23, %s5534_s23, %s5536_s27  }
  0x4f   : > { %s5549_s4 = sld [smem:[#allocation20_spill]] }
  0x55   : > { %s4614_s10 = scalar_lea.hbm %s5549_s4, 256 }
  0x56   : > { %p4615_p6 = scmp.ne.s32.totalorder %s5549_s4, %s4614_s10  ;;  %p4621_p5 = scmp.lt.u32.totalorder %s4614_s10, %s5549_s4 }
  0x58   : > { %p4617_p10 = pnand %p4615_p6, %p4900_p13 }
  0x5a   : > { %p4618_p3 = pneg %p4617_p10 }
  0x5c   : > { %p4623_p7 = pnand %p4621_p5, %p4618_p3 }
  0x5e   : > { %4626 = shalt.err (!%p4623_p7)
}
  0x5f   : > { %s4627_s16 = scalar_lea.vmem %s210_s8, 256  ;;  %p4635_p1 = scmp.lt.s32.totalorder %s210_s8, %s210_s8 }
  0x60   : > { %p4628_p9 = scmp.ne.s32.totalorder %s210_s8, %s4627_s16  ;;  %p4636_p2 = scmp.lt.s32.totalorder %s4627_s16, %s4627_s16 }
  0x62   : > { %p4630_p12 = pnand %p4628_p9, %p4900_p13  ;;  %p4637_p4 = por %p4636_p2, %p4635_p1 }
  0x64   : > { %p4631_p0 = pneg %p4630_p12 }
  0x66   : > { %p4638_p8 = pnand %p4637_p4, %p4631_p0 }
  0x68   : > { %4641 = shalt.err (!%p4638_p8)
}
  0x69   : > { %4433 = dma.hbm_to_vmem [thread:$0]  (!%p4884_p11), %s5549_s4, 256, %s210_s8, [#allocation9], %s5534_s23, %s5534_s23, %s5536_s27  }
  0x6a   : > { %s4973_s14 = sadd.s32 1, %s4780_s21   ;;  %s32_s17 = sadd.s32 1, %s4776_s20 }
  0x6b   : > { %s29_s29 = ssub.s32 %s4780_s21, %s4973_s14  ;;  %p39_p8 = scmp.ne.s32.totalorder %s4776_s20, %s4772_s19 }
  0x6c   : > { %p30_p4 = scmp.eq.s32.totalorder %s29_s29, 0  ;;  %p40_p13 = scmp.eq.s32.totalorder %s4780_s21, 0 }
  0x6d   : > { %p4448_p6 = scmp.lt.s32.totalorder %s4780_s21, 2  ;;  %p5550_p3 = scmp.eq.s32.totalorder %s4854_s22, 1 }
  0x6e   : > { %s4983_s30 = scalar_select %p30_p4, %s4776_s20, %s32_s17  }
  0x6f   : > { %p41_p10 = por %p40_p13, %p39_p8  ;;  %p4987_p5 = por %p5550_p3, %p39_p8 }
  0x70   : > { %s223_s9 = sand.u32 1, %s4776_s20   ;;  %s4102_s10 = sshll.u32 %s4780_s21, 8 }
  0x71   : > { %s4993_s8 = sshll.u32 %s223_s9, 4  ;;  %s5552_s0 = sld [smem:[#allocation17_spill]] }
  0x72   : > { %s227_s15 = scalar_lea.vmem [#allocation2], %s4993_s8  ;;  %p5001_p11 = pnand %p4448_p6, %p41_p10 }
  0x73   : > { %s234_s16 = sshll.u32 %s227_s15, 4  ;;  %s5010_s17 = scalar_lea.hbm %s5526_s1, %s4102_s10  ;;  %s5005_s16 = int_to_ptr.vmem [resolvable:$true] %s234_s16 }
  0x74   : > { %s5012_s11 = scalar_lea.sflag [#allocation3], %s223_s9  ;;  %p4644_p9 = pneg %p5001_p11 }
  0x77   : > { %s4998_s13 = scalar_lea.hbm %s5552_s0, %s4102_s10  ;;  %s4647_s27 = scalar_lea.hbm %s5552_s0, 512 }
  0x78   : > { %s4642_s12 = scalar_lea.hbm %s4998_s13, 256  ;;  %p4648_p1 = scmp.lt.u32.totalorder %s4998_s13, %s5552_s0 }
  0x79   : > { %p4643_p7 = scmp.ne.s32.totalorder %s4998_s13, %s4642_s12  ;;  %p4649_p2 = scmp.lt.u32.totalorder %s4647_s27, %s4642_s12 }
  0x7a   : > { %p4651_p8 = scmp.lt.u32.totalorder %s4642_s12, %s4998_s13 }
  0x7b   : > { %p4645_p12 = pnand %p4644_p9, %p4643_p7  ;;  %p4650_p4 = por %p4649_p2, %p4648_p1 }
  0x7d   : > { %p4646_p0 = pneg %p4645_p12  ;;  %p4652_p13 = por %p4651_p8, %p4650_p4 }
  0x7f   : > { %p4653_p6 = pnand %p4652_p13, %p4646_p0 }
  0x81   : > { %4656 = shalt.err (!%p4653_p6)
}
  0x82   : > { %s4657_s9 = scalar_lea.vmem %s5005_s16, 256  ;;  %s4787_s23 = smov [#allocation2]  }
  0x83   : > { %p4658_p10 = scmp.ne.s32.totalorder %s5005_s16, %s4657_s9  ;;  %s4662_s10 = sshll.u32 %s4787_s23, 4  ;;  %s4663_s10 = int_to_ptr.vmem [resolvable:$false] %s4662_s10 }
  0x84   : > { %s4664_s2 = scalar_lea.vmem %s4663_s10, 512  ;;  %p4665_p12 = scmp.lt.s32.totalorder %s5005_s16, %s4663_s10 }
  0x85   : > { %p4660_p3 = pnand %p4658_p10, %p4644_p9  ;;  %p4666_p1 = scmp.lt.s32.totalorder %s4664_s2, %s4657_s9 }
  0x87   : > { %p4661_p7 = pneg %p4660_p3  ;;  %p4667_p2 = por %p4666_p1, %p4665_p12 }
  0x89   : > { %p4668_p4 = pnand %p4667_p2, %p4661_p7 }
  0x8b   : > { %4671 = shalt.err (!%p4668_p4)
}
  0x8c   : > { %s5554_s3 = smov 8   ;;  %s5555_s27 = smov 128  }
  0x8d   : > { %4437 = dma.hbm_to_vmem [thread:$0]  (!%p5001_p11), %s4998_s13, 256, %s5005_s16, %s5012_s11, %s5555_s27, %s5555_s27, %s5554_s3  }
  0x8e   : > { %s248_s28 = scalar_lea.vmem [#allocation5], %s4993_s8  ;;  %s244_s12 = sand.u32 1, %s4780_s21  }
  0x8f   : > { %s255_s29 = sshll.u32 %s248_s28, 4  ;;  %s5047_s15 = scalar_lea.sflag [#allocation6], %s244_s12  ;;  %s5045_s29 = int_to_ptr.vmem [resolvable:$true] %s255_s29 }
  0x90   : > { %s4672_s9 = scalar_lea.hbm %s5010_s17, 256  ;;  %s4677_s2 = scalar_lea.hbm %s5526_s1, 512 }
  0x91   : > { %p4673_p0 = scmp.ne.s32.totalorder %s5010_s17, %s4672_s9  ;;  %p4678_p6 = scmp.lt.u32.totalorder %s5010_s17, %s5526_s1 }
  0x92   : > { %p4679_p10 = scmp.lt.u32.totalorder %s4677_s2, %s4672_s9  ;;  %p4681_p7 = scmp.lt.u32.totalorder %s4672_s9, %s5010_s17 }
  0x93   : > { %p4675_p8 = pnand %p4673_p0, %p4644_p9 }
  0x94   : > { %p4680_p3 = por %p4679_p10, %p4678_p6 }
  0x95   : > { %p4676_p13 = pneg %p4675_p8 }
  0x96   : > { %p4682_p12 = por %p4681_p7, %p4680_p3 }
  0x98   : > { %p4683_p1 = pnand %p4682_p12, %p4676_p13 }
  0x9a   : > { %4686 = shalt.err (!%p4683_p1)
}
  0x9b   : > { %s4687_s8 = scalar_lea.vmem %s5045_s29, 256  ;;  %s4788_s13 = smov [#allocation5]  }
  0x9c   : > { %p4688_p2 = scmp.ne.s32.totalorder %s5045_s29, %s4687_s8  ;;  %s4692_s16 = sshll.u32 %s4788_s13, 4  ;;  %s4693_s16 = int_to_ptr.vmem [resolvable:$false] %s4692_s16 }
  0x9d   : > { %s4694_s0 = scalar_lea.vmem %s4693_s16, 512  ;;  %p4695_p8 = scmp.lt.s32.totalorder %s5045_s29, %s4693_s16 }
  0x9e   : > { %p4690_p4 = pnand %p4688_p2, %p4644_p9  ;;  %p4696_p6 = scmp.lt.s32.totalorder %s4694_s0, %s4687_s8 }
  0xa0   : > { %p4691_p0 = pneg %p4690_p4  ;;  %p4697_p10 = por %p4696_p6, %p4695_p8 }
  0xa2   : > { %p4698_p3 = pnand %p4697_p10, %p4691_p0 }
  0xa4   : > { %4701 = shalt.err (!%p4698_p3)
}
  0xa5   : > { %4440 = dma.hbm_to_vmem [thread:$0]  (!%p5001_p11), %s5010_s17, 256, %s5045_s29, %s5047_s15, %s5555_s27, %s5555_s27, %s5554_s3  }
  0xa6   : > { %p5556_p9 = scmp.ne.s32.totalorder %s5544_s26, 0 }
  0xa7   : > { %s5079_s4 = sand.u32 (!%p5556_p9), 1, %s4772_s19   ;;  %p5557_p13 = scmp.ne.s32.totalorder (!%p5556_p9), %s5542_s24, 0 }
  0xa8   : > { %267 = sbr.rel (%p5556_p9) target bundleno = 2288 (0x8f0), region = 40  ;;  %s5082_s11 = sshll.u32 (!%p5556_p9), %s5079_s4, 4 }
  0xa9   : > { %s270_s6 = scalar_lea.sflag (!%p5556_p9), [#allocation3], %s5079_s4  ;;  %s273_s28 = scalar_lea.vmem (!%p5556_p9), [#allocation2], %s5082_s11 }
  0xaf   : > { %4747 = dma.done.wait (%p5557_p13), %s270_s6, 256  }
  0xb0   : > { %4749 = vsyncadd (%p5557_p13), %s270_s6, 4294967040  ;;  %s278_s26 = sand.u32 1, %s4854_s22   ;;  %s282_s3 = scalar_lea.vmem [#allocation5], %s5082_s11 }
  0xb1   : > { %s279_s17 = scalar_lea.sflag [#allocation6], %s278_s26 }
  0xb2   : > { %4751 = dma.done.wait (%p5557_p13), %s279_s17, 256  }
  0xb3   : > { %4753 = vsyncadd (%p5557_p13), %s279_s17, 4294967040  ;;  %p5558_p11 = scmp.eq.s32.totalorder %s4854_s22, 0 }
  0xb5   : > { %4755 = dma.done.wait (%p5558_p11), [#allocation6], 256   ;;  %p5559_p7 = pmov %p5558_p11 }
  0xb7   : > { %4757 = vsyncadd (%p5559_p7), [#allocation6], 4294967040  ;;  %p5560_p12 = pmov %p5559_p7 }
  0xb8   : > { %p5561_p1 = pmov %p5559_p7 }
  0xb9   : > { %4759 = dma.done.wait (%p5560_p12), [#allocation9], 512  }
  0xba   : > { %4761 = vsyncadd (%p5561_p1), [#allocation9], 4294966784  ;;  %vm332_vm0 = vcmask 130048   ;;  %v328_v0 = vld [vmem:[%s282_s3] sm:$0xff]  ;;  %v329_v1 = vld [vmem:[%s282_s3 + $0x8] sm:$0xff]  ;;  %v4789_v10 = vmov 0.0  }
  0xbb   : > { %v326_v2 = vld [vmem:[%s273_s28] sm:$0xff]  ;;  %v4366_v3 = vpack.c.bf16 %v329_v1, %v328_v0  ;;  %v327_v4 = vld [vmem:[%s273_s28 + $0x8] sm:$0xff]  ;;  %vm4790_vm1 = vmmov 0   ;;  %vm497_vm2 = vcmask 261120   ;;  %s4791_s24 = smov 96   ;;  %s4792_s27 = smov 64  }
  0xbc   : > { %v414_v5 = vld [vmem:[#allocation8] sm:$0xff]  ;;  %v4362_v6 = vpack.c.bf16 %v327_v4, %v326_v2  ;;  %v330_v7 = vld [vmem:[#allocation7] sm:$0xff]  ;;  %v415_v8 = vld [vmem:[#allocation8 + $0x8] sm:$0xff]  ;;  %s4793_s29 = smov 32   ;;  %v4794_v33 = vmov 683565275  }
  0xbd   : > { %4192 = vmatprep.mubr.msk.f32.mxu1 %vm332_vm0, %v414_v5  ;;  %4367 = vmatprep.subr.bf16.mxu1 %v4366_v3  ;;  %v331_v9 = vld [vmem:[#allocation7 + $0x8] sm:$0xff]  ;;  %v4795_v35 = vmov 2475754826   ;;  %v4796_v38 = vmov 2131351028   ;;  %s325_s12 = scalar_lea.vmem [#allocation11], %s5082_s11 }
  0xbe   : > { %4185 = vmatprep.mubr.msk.f32.mxu0 %vm332_vm0, %v330_v7  ;;  %4369 = vmatpush3.bf16.msra.mxu1 %v4366_v3  ;;  %v4797_v41 = vmov 2102212464   ;;  %v4798_v44 = vmov 920167782   ;;  %v4799_v47 = vmov 1326507024  }
  0xbf   : > { %4363 = vmatprep.subr.bf16.mxu0 %v4362_v6  ;;  %4200 = vmatprep.subr.mxu1 %v4789_v10  ;;  %s3864_s15 = sshll.u32 %s325_s12, 4  ;;  %s4104_s9 = sshll.u32 %s4854_s22, 8  ;;  %s5476_s15 = int_to_ptr.vmem [resolvable:$true] %s3864_s15 }
  0xc0   : > { %4365 = vmatpush3.bf16.msra.mxu0 %v4362_v6  ;;  %s5481_s2 = scalar_lea.hbm %s5530_s5, %s4104_s9  ;;  %s3851_s8 = scalar_lea.sflag [#allocation4], %s5079_s4 }
  0xc1   : > { %4193 = vmatmul.mubr.msk.f32.vlgmr.msra.gmra.mrb[0].mxu1 %vm332_vm0, %v415_v8  ;;  %4195 = vmatprep.subr.mxu0 %v4789_v10  ;;  %s4702_s13 = scalar_lea.vmem %s5476_s15, 256  ;;  %s4800_s22 = smov [#allocation11]  }
  0xc2   : > { %4202 = vmatprep.mubr.msk.f32.mxu1 %vm4790_vm1, %v4789_v10  ;;  %p4703_p2 = scmp.ne.s32.totalorder %s5476_s15, %s4702_s13  ;;  %s4706_s16 = sshll.u32 %s4800_s22, 4  ;;  %s4707_s16 = int_to_ptr.vmem [resolvable:$false] %s4706_s16 }
  0xc3   : > { %4186 = vmatmul.mubr.msk.f32.vlgmr.msra.gmra.mrb[0].mxu0 %vm332_vm0, %v331_v9  ;;  %s4708_s0 = scalar_lea.vmem %s4707_s16, 512  ;;  %p4709_p8 = scmp.lt.s32.totalorder %s5476_s15, %s4707_s16 }
  0xc4   : > { %4197 = vmatprep.mubr.msk.f32.mxu0 %vm4790_vm1, %v4789_v10  ;;  %p4704_p4 = pnand %p4703_p2, %p4987_p5  ;;  %p4710_p6 = scmp.lt.s32.totalorder %s4708_s0, %s4702_s13 }
  0xc6   : > { %p4705_p0 = pneg %p4704_p4  ;;  %p4711_p10 = por %p4710_p6, %p4709_p8 }
  0xc8   : > { %p4712_p3 = pnand %p4711_p10, %p4705_p0 }
 0x194   : > { %v5114_v11 = vpop.f32.mrb[0].mxu1 }
 0x195   : > { %1383 = vrot.lane.b32.xlu1 %v5114_v11, %s4791_s24  ;;  %v488_v12 = vpop.f32.mrb[1].mxu1  ;;  %4201 = vmatpush3.xpose.msk.msra.mxu1 %vm497_vm2, %v5114_v11 }
 0x196   : > { %v4187_v13 = vpop.f32.mrb[0].mxu0  ;;  %1305 = vrot.lane.b32.xlu0 %v488_v12, %s4791_s24  ;;  %4196 = vmatpush3.xpose.msk.msra.mxu0 %vm497_vm2, %v488_v12 }
 0x197   : > { %v405_v14 = vpop.f32.mrb[1].mxu0  ;;  %4215 = vmatprep.subr.mxu1 %v4789_v10  ;;  %4205 = vmatprep.subr.mxu0 %v4789_v10 }
 0x198   : > { %4203 = vmatmul.mubr.msk.f32.vlgmr.msra.gmra.mrb[2].mxu1 %vm497_vm2, %v4187_v13 }
 0x199   : > { %4216 = vmatpush3.msra.mxu1 %v488_v12  ;;  %1303 = vrot.lane.b32.xlu1 %v405_v14, %s4791_s24 }
 0x19a   : > { %4198 = vmatmul.mubr.msk.f32.vlgmr.msra.gmra.mrb[2].mxu0 %vm497_vm2, %v405_v14  ;;  %1381 = vrot.lane.b32.xlu0 %v4187_v13, %s4791_s24 }
 0x19b   : > { %4206 = vmatpush3.xpose.msk.msra.mxu0 %vm497_vm2, %v488_v12  ;;  %4207 = vmatprep.mubr.msk.f32.mxu0 %vm4790_vm1, %v4789_v10 }
 0x19c   : > { %4210 = vmatprep.subr.mxu0 %v4789_v10  ;;  %4217 = vmatprep.mubr.msk.f32.mxu1 %vm4790_vm1, %v4789_v10 }
 0x19d   : > { %2191 = vrot.lane.b32.xlu1 %v4187_v13, %s4792_s27  ;;  %4220 = vmatprep.subr.mxu1 %v4789_v10 }
 0x19e   : > { %4208 = vmatmul.mubr.msk.f32.vlgmr.msra.gmra.mrb[4].mxu0 %vm497_vm2, %v4187_v13  ;;  %2115 = vrot.lane.b32.xlu0 %v488_v12, %s4792_s27 }
 0x19f   : > { %4211 = vmatpush3.xpose.msk.msra.mxu0 %vm497_vm2, %v5114_v11  ;;  %4212 = vmatprep.mubr.msk.f32.mxu0 %vm4790_vm1, %v4789_v10 }
 0x1a0   : > { %4225 = vmatprep.subr.mxu0 %v4789_v10 }
 0x1a1   : > { %2113 = vrot.lane.b32.xlu1 %v405_v14, %s4792_s27 }
 0x1a2   : > { %2193 = vrot.lane.b32.xlu0 %v5114_v11, %s4792_s27 }
 0x1a5   : > { %3001 = vrot.lane.b32.xlu1 %v4187_v13, %s4793_s29 }
 0x1a6   : > { %4213 = vmatmul.mubr.msk.f32.vlgmr.msra.gmra.mrb[4].mxu0 %vm497_vm2, %v405_v14  ;;  %2925 = vrot.lane.b32.xlu0 %v488_v12, %s4793_s29 }
 0x1a7   : > { %4226 = vmatpush3.msra.mxu0 %v488_v12  ;;  %4227 = vmatprep.mubr.msk.f32.mxu0 %vm4790_vm1, %v4789_v10 }
 0x1a8   : > { %4230 = vmatprep.subr.mxu0 %v4789_v10 }
 0x1a9   : > { %2923 = vrot.lane.b32.xlu1 %v405_v14, %s4793_s29 }
 0x1aa   : > { %3003 = vrot.lane.b32.xlu0 %v5114_v11, %s4793_s29 }
 0x26b   : > { %v5155_v15 = vpop.f32.mrb[2].mxu1 }
 0x26c   : > { %v4204_v16 = vpop.f32.mrb[3].mxu1 }
 0x26d   : > { %v5157_v17 = vpop.f32.mrb[2].mxu0 }
 0x26e   : > { %v650_v18 = vsub.f32 %v5157_v17, %v5155_v15  ;;  %v4199_v19 = vpop.f32.mrb[3].mxu0 }
 0x279   : > { %v787_v20 = vpop.f32.mrb[4].mxu0 }
 0x27a   : > { %v5161_v21 = vmul.f32 2.0, %v787_v20  ;;  %v4214_v22 = vpop.f32.mrb[5].mxu0 }
 0x27c   : > { %v805_v23 = vand.u32 2139095040, %v5161_v21  ;;  %v802_v27 = vand.u32 2147483647, %v5161_v21  ;;  %vm804_vm10 = vcmp.lt.s32.totalorder %v5161_v21, 0 }
 0x27e   : > { %v806_v24 = vshrl.u32 %v805_v23, 23  ;;  %v809_v30 = vand.u32 8388607, %v802_v27  ;;  %vm803_vm11 = vcmp.le.f32.partialorder %v802_v27, 0.7853982 }
 0x280   : > { %v4020_v25 = vadd.s32 4294967169, %v806_v24  ;;  %v810_v49 = vor.u32 8388608, %v809_v30 }
 0x282   : > { %v812_v26 = vadd.s32 1, %v4020_v25  ;;  %v850_v63 = vshll.u32 %v810_v49, 8 }
 0x284   : > { %vm813_vm3 = vcmp.gt.s32.totalorder %v812_v26, 0 }
 0x285   : > { %v814_v28 = vsel %vm813_vm3, %v812_v26, 0 }
 0x286   : > { %v816_v29 = vand.u32 31, %v814_v28  ;;  %v815_v32 = vshrl.u32 %v814_v28, 5 }
 0x288   : > { %v817_v31 = vsub.s32 32, %v816_v29  ;;  %v819_v34 = vshll.u32 %v4794_v33, %v816_v29  ;;  %v822_v36 = vshll.u32 %v4795_v35, %v816_v29  ;;  %v825_v40 = vshll.u32 %v4796_v38, %v816_v29 }
 0x289   : > { %v828_v43 = vshll.u32 %v4797_v41, %v816_v29  ;;  %v831_v46 = vshll.u32 %v4798_v44, %v816_v29  ;;  %vm834_vm4 = vcmp.lt.s32.totalorder %v815_v32, 1  ;;  %vm837_vm5 = vcmp.lt.s32.totalorder %v815_v32, 4 }
 0x28a   : > { %v820_v37 = vshrl.u32 %v4795_v35, %v817_v31  ;;  %v823_v39 = vshrl.u32 %v4796_v38, %v817_v31  ;;  %v826_v42 = vshrl.u32 %v4797_v41, %v817_v31  ;;  %v829_v45 = vshrl.u32 %v4798_v44, %v817_v31 }
 0x28b   : > { %v832_v48 = vshrl.u32 %v4799_v47, %v817_v31  ;;  %v818_v58 = vshrl.u32 %v4794_v33, %v817_v31  ;;  %vm836_vm6 = vcmp.lt.s32.totalorder %v815_v32, 3  ;;  %vm835_vm7 = vcmp.lt.s32.totalorder %v815_v32, 2 }
 0x28c   : > { %v821_v50 = vor.u32 %v820_v37, %v819_v34  ;;  %v824_v51 = vor.u32 %v823_v39, %v822_v36  ;;  %v827_v52 = vor.u32 %v826_v42, %v825_v40  ;;  %v830_v53 = vor.u32 %v829_v45, %v828_v43 }
 0x28d   : > { %v833_v54 = vor.u32 %v832_v48, %v831_v46  ;;  %v4019_v32 = vclamps-f32 %v650_v18, 12.0 }
 0x28e   : > { %v839_v55 = vsel %vm837_vm5, %v827_v52, 2102212464  ;;  %v842_v56 = vsel %vm834_vm4, %v821_v50, %v824_v51  ;;  %v846_v57 = vsel %vm834_vm4, %v824_v51, %v827_v52  ;;  %v843_v59 = vsel %vm837_vm5, %v830_v53, 920167782 }
 0x28f   : > { %v847_v60 = vsel %vm837_vm5, %v833_v54, 1326507024  ;;  %v844_v61 = vsel %vm836_vm6, %v827_v52, %v843_v59  ;;  %v838_v0 = vsel %vm834_vm4, %v818_v58, %v821_v50  ;;  %v840_v1 = vsel %vm836_vm6, %v824_v51, %v839_v55 }
 0x290   : > { %v848_v62 = vsel %vm836_vm6, %v830_v53, %v847_v60  ;;  %v845_v2 = vsel %vm835_vm7, %v842_v56, %v844_v61  ;;  %v841_v8 = vsel %vm835_vm7, %v838_v0, %v840_v1  ;;  %v793_v42 = vmul.f32 2.0, %v4019_v32 }
 0x291   : > { %v849_v3 = vsel %vm835_vm7, %v846_v57, %v848_v62  ;;  %v5181_v6 = vmul.u32.u64.low %v850_v63, %v845_v2  ;;  %v5182_v7 = vmul.u32.u64.high %v850_v63, %v845_v2, %v5181_v6  ;;  %v857_v12 = vmul.u32 %v850_v63, %v841_v8 }
 0x292   : > { %v5178_v4 = vmul.u32.u64.low %v850_v63, %v849_v3  ;;  %v5179_v5 = vmul.u32.u64.high %v850_v63, %v849_v3, %v5178_v4  ;;  %v796_v43 = vmul.f32 -2.0, %v4019_v32  ;;  %v794_v49 = vmul.f32 1.442695, %v793_v42 }
 0x293   : > { %v860_v9 = vadd.s32 1, %v5182_v7  ;;  %vm894_vm5 = vweird.f32 %v5161_v21  ;;  %vm1015_vm6 = vcmask 64512  }
 0x294   : > { %vm859_vm8 = vc.u32 %v5179_v5, %v5181_v6  ;;  %v858_v29 = vadd.s32 %v5181_v6, %v5179_v5  ;;  %v797_v50 = vmul.f32 1.442695, %v796_v43  ;;  %4518 = vpow2.f32 %v794_v49 }
 0x295   : > { %v861_v13 = vsel %vm859_vm8, %v860_v9, %v5182_v7 }
 0x296   : > { %v862_v14 = vadd.s32 %v861_v13, %v857_v12  ;;  %4520 = vpow2.f32 %v797_v50 }
 0x298   : > { %v863_v16 = vadd.s32 536870912, %v862_v14 }
 0x29a   : > { %v864_v19 = vshrl.u32 %v863_v16, 30 }
 0x29c   : > { %v865_v20 = vshll.u32 %v864_v19, 30  ;;  %v888_v52 = vsub.s32 4, %v864_v19 }
 0x29e   : > { %v866_v22 = vsub.s32 %v862_v14, %v865_v20  ;;  %v889_v17 = vsel %vm804_vm10, %v888_v52, %v864_v19  ;;  %v4519_v56 = vpop.eup %4518  ;;  %v1306_v20 = vpop.permute.xlu0 %1305 }
 0x29f   : > { %v891_v54 = vsel %vm803_vm11, 0, %v889_v17 }
 0x2a0   : > { %v868_v23 = vsub.s32 0, %v866_v22  ;;  %v1003_v55 = vadd.s32 3, %v891_v54  ;;  %v4521_v57 = vpop.eup %4520  ;;  %v895_v58 = vand.u32 3, %v891_v54 }
 0x2a1   : > { %v799_v62 = vadd.f32 %v4521_v57, %v4519_v56  ;;  %v907_v12 = vsub.f32 %v4519_v56, %v4521_v57 }
 0x2a2   : > { %v4021_v24 = vmin.u32 %v868_v23, %v866_v22  ;;  %v1004_v59 = vand.u32 3, %v1003_v55  ;;  %vm900_vm12 = vcmp.eq.s32.totalorder %v895_v58, 2  ;;  %vm897_vm14 = vcmp.eq.s32.totalorder %v895_v58, 0 }
 0x2a3   : > { %vm896_vm3 = vcmp.lt.s32.totalorder %v895_v58, 2  ;;  %v800_v4 = vmul.f32 0.5, %v799_v62  ;;  %v908_v13 = vmul.f32 0.5, %v907_v12 }
 0x2a4   : > { %v870_v25 = vclz %v4021_v24  ;;  %vm1009_vm13 = vcmp.eq.s32.totalorder %v1004_v59, 2  ;;  %vm1006_vm15 = vcmp.eq.s32.totalorder %v1004_v59, 0  ;;  %vm1005_vm4 = vcmp.lt.s32.totalorder %v1004_v59, 2 }
 0x2a6   : > { %v4022_v26 = vadd.s32 4294967294, %v870_v25 }
 0x2a8   : > { %vm4023_vm9 = vcmp.lt.s32.totalorder %v4022_v26, 0 }
 0x2a9   : > { %v873_v28 = vsel %vm4023_vm9, 0, %v4022_v26 }
 0x2aa   : > { %v874_v30 = vsub.s32 32, %v873_v28  ;;  %v878_v31 = vsub.s32 4294967266, %v873_v28  ;;  %v875_v34 = vshll.u32 %v866_v22, %v873_v28  ;;  %v1382_v22 = vpop.permute.xlu0 %1381 }
 0x2ac   : > { %v876_v36 = vshrl.u32 %v858_v29, %v874_v30  ;;  %v879_v37 = vadd.s32 127, %v878_v31 }
 0x2ae   : > { %v877_v39 = vor.u32 %v876_v36, %v875_v34  ;;  %v880_v40 = vshll.u32 %v879_v37, 23 }
 0x2b0   : > { %v881_v45 = vor.u32 4788187, %v880_v40  ;;  %v884_v48 = vcvt.s32.f32 %v877_v39 }
 0x2b2   : > { %v882_v46 = vand.u32 2147483647, %v881_v45 }
 0x2b4   : > { %v885_v51 = vmul.f32 %v884_v48, %v882_v46 }
 0x2b6   : > { %v886_v53 = vxor.u32 2147483648, %v885_v51 }
 0x2b8   : > { %v887_v15 = vsel %vm804_vm10, %v886_v53, %v885_v51 }
 0x2b9   : > { %v890_v18 = vsel %vm803_vm11, %v5161_v21, %v887_v15  ;;  %v5206_v21 = vpop.permute.xlu1 %1383 }
 0x2ba   : > { %4522 = vcosq.f32 %v890_v18 }
 0x2bb   : > { %4524 = vsinq.f32 %v890_v18 }
 0x2c4   : > { %v4523_v60 = vpop.eup %4522 }
 0x2c5   : > { %v4525_v61 = vpop.eup %4524  ;;  %v901_v63 = vxor.u32 2147483648, %v4523_v60 }
 0x2c6   : > { %v898_v0 = vxor.u32 2147483648, %v4525_v61 }
 0x2c7   : > { %v902_v27 = vsel %vm900_vm12, %v901_v63, %v4525_v61  ;;  %v1011_v1 = vsel %vm1009_vm13, %v901_v63, %v4525_v61 }
 0x2c8   : > { %v899_v2 = vsel %vm897_vm14, %v4523_v60, %v898_v0  ;;  %v1008_v3 = vsel %vm1006_vm15, %v4523_v60, %v898_v0 }
 0x2c9   : > { %v903_v5 = vsel %vm896_vm3, %v899_v2, %v902_v27  ;;  %v1012_v6 = vsel %vm1005_vm4, %v1008_v3, %v1011_v1 }
 0x2ca   : > { %v904_v7 = vsel %vm894_vm5, nan, %v903_v5  ;;  %v1013_v8 = vsel %vm894_vm5, nan, %v1012_v6 }
 0x2cb   : > { %v905_v9 = vadd.f32 %v904_v7, %v800_v4 }
 0x2cd   : > { %4526 = vrcp.f32 %v905_v9 }
 0x2d7   : > { %v4527_v14 = vpop.eup %4526 }
 0x2d8   : > { %v909_v16 = vmul.f32 %v4527_v14, %v908_v13  ;;  %v1014_v19 = vmul.f32 %v4527_v14, %v1013_v8 }
 0x2da   : > { %4218 = vmatmul.mubr.msk.f32.vlgmr.msra.gmra.mrb[4].mxu1 %vm1015_vm6, %v909_v16  ;;  %4228 = vmatmul.mubr.msk.f32.vlgmr.msra.gmra.mrb[6].mxu0 %vm1015_vm6, %v1014_v19 }
 0x2db   : > { %4221 = vmatpush3.msra.mxu1 %v5114_v11  ;;  %4231 = vmatpush3.msra.mxu0 %v5114_v11  ;;  %v1304_v11 = vpop.permute.xlu1 %1303 }
 0x2dc   : > { %4222 = vmatprep.mubr.msk.f32.mxu1 %vm4790_vm1, %v4789_v10  ;;  %4235 = vmatprep.subr.mxu1 %v4789_v10 }
 0x2dd   : > { %4232 = vmatprep.mubr.msk.f32.mxu0 %vm4790_vm1, %v4789_v10  ;;  %4245 = vmatprep.subr.mxu0 %v4789_v10 }
 0x2de   : > { %4223 = vmatmul.mubr.msk.f32.vlgmr.msra.gmra.mrb[6].mxu1 %vm1015_vm6, %v1014_v19 }
 0x2df   : > { %4237 = vmatprep.mubr.msk.f32.mxu1 %vm4790_vm1, %v4789_v10 }
 0x2e2   : > { %4236 = vmatpush3.xpose.msk.msra.mxu1 %vm497_vm2, %v1306_v20  ;;  %4233 = vmatmul.mubr.msk.f32.vlgmr.msra.gmra.mrb[6].mxu0 %vm1015_vm6, %v909_v16 }
 0x2e3   : > { %4246 = vmatpush3.xpose.msk.msra.mxu0 %vm497_vm2, %v1306_v20  ;;  %4240 = vmatprep.subr.mxu1 %v4789_v10 }
 0x2e4   : > { %4247 = vmatprep.mubr.msk.f32.mxu0 %vm4790_vm1, %v4789_v10  ;;  %4250 = vmatprep.subr.mxu0 %v4789_v10 }
 0x2e5   : > { %4238 = vmatmul.mubr.msk.f32.vlgmr.msra.gmra.mrb[8].mxu1 %vm497_vm2, %v1304_v11 }
 0x2e6   : > { %4241 = vmatpush3.xpose.msk.msra.mxu1 %vm497_vm2, %v5206_v21  ;;  %4248 = vmatmul.mubr.msk.f32.vlgmr.msra.gmra.mrb[8].mxu0 %vm497_vm2, %v1382_v22 }
 0x2e7   : > { %4251 = vmatpush3.xpose.msk.msra.mxu0 %vm497_vm2, %v5206_v21  ;;  %4242 = vmatprep.mubr.msk.f32.mxu1 %vm4790_vm1, %v4789_v10 }
 0x2e8   : > { %4255 = vmatprep.subr.mxu1 %v4789_v10  ;;  %4252 = vmatprep.mubr.msk.f32.mxu0 %vm4790_vm1, %v4789_v10 }
 0x2e9   : > { %4243 = vmatmul.mubr.msk.f32.vlgmr.msra.gmra.mrb[10].mxu1 %vm497_vm2, %v1382_v22  ;;  %4265 = vmatprep.subr.mxu0 %v4789_v10 }
 0x2ea   : > { %4256 = vmatpush3.msra.mxu1 %v1306_v20  ;;  %4257 = vmatprep.mubr.msk.f32.mxu1 %vm4790_vm1, %v4789_v10 }
 0x2eb   : > { %4260 = vmatprep.subr.mxu1 %v4789_v10 }
 0x2ee   : > { %4253 = vmatmul.mubr.msk.f32.vlgmr.msra.gmra.mrb[8].mxu0 %vm497_vm2, %v1304_v11 }
 0x2ef   : > { %4266 = vmatpush3.msra.mxu0 %v1306_v20  ;;  %4267 = vmatprep.mubr.msk.f32.mxu0 %vm4790_vm1, %v4789_v10 }
 0x2f0   : > { %4270 = vmatprep.subr.mxu0 %v4789_v10 }
 0x3ad   : > { %v5238_v23 = vpop.f32.mrb[4].mxu1 }
 0x3ae   : > { %v4219_v24 = vpop.f32.mrb[5].mxu1 }
 0x3b1   : > { %v5240_v25 = vpop.f32.mrb[6].mxu1 }
 0x3b2   : > { %v1162_v26 = vsub.f32 %v5238_v23, %v5240_v25  ;;  %v4224_v28 = vpop.f32.mrb[7].mxu1 }
 0x3b5   : > { %v5244_v29 = vpop.f32.mrb[6].mxu0 }
 0x3b6   : > { %v4234_v30 = vpop.f32.mrb[7].mxu0 }
 0x3b8   : > { %v5246_v31 = vpop.f32.mrb[8].mxu1 }
 0x3b9   : > { %v4239_v32 = vpop.f32.mrb[9].mxu1 }
 0x3bc   : > { %v5248_v34 = vpop.f32.mrb[10].mxu1 }
 0x3bd   : > { %v1459_v36 = vsub.f32 %v5246_v31, %v5248_v34  ;;  %v4244_v37 = vpop.f32.mrb[11].mxu1 }
 0x3c1   : > { %v1596_v39 = vpop.f32.mrb[8].mxu0 }
 0x3c2   : > { %v5252_v40 = vmul.f32 2.0, %v1596_v39  ;;  %v4254_v42 = vpop.f32.mrb[9].mxu0 }
 0x3c4   : > { %v1614_v43 = vand.u32 2139095040, %v5252_v40  ;;  %v1611_v49 = vand.u32 2147483647, %v5252_v40  ;;  %vm1613_vm14 = vcmp.lt.s32.totalorder %v5252_v40, 0 }
 0x3c6   : > { %v1615_v45 = vshrl.u32 %v1614_v43, 23  ;;  %v1618_v52 = vand.u32 8388607, %v1611_v49  ;;  %vm1612_vm15 = vcmp.le.f32.partialorder %v1611_v49, 0.7853982 }
 0x3c8   : > { %v4041_v46 = vadd.s32 4294967169, %v1615_v45  ;;  %v1619_v62 = vor.u32 8388608, %v1618_v52 }
 0x3ca   : > { %v1621_v48 = vadd.s32 1, %v4041_v46  ;;  %v1659_v13 = vshll.u32 %v1619_v62, 8 }
 0x3cc   : > { %vm1622_vm7 = vcmp.gt.s32.totalorder %v1621_v48, 0 }
 0x3cd   : > { %v1623_v50 = vsel %vm1622_vm7, %v1621_v48, 0 }
 0x3ce   : > { %v1625_v51 = vand.u32 31, %v1623_v50  ;;  %v1624_v15 = vshrl.u32 %v1623_v50, 5 }
 0x3d0   : > { %v1626_v53 = vsub.s32 32, %v1625_v51  ;;  %v1628_v17 = vshll.u32 %v4794_v33, %v1625_v51  ;;  %v1631_v18 = vshll.u32 %v4795_v35, %v1625_v51  ;;  %v1634_v56 = vshll.u32 %v4796_v38, %v1625_v51 }
 0x3d1   : > { %v1637_v58 = vshll.u32 %v4797_v41, %v1625_v51  ;;  %v1640_v60 = vshll.u32 %v4798_v44, %v1625_v51  ;;  %vm1643_vm8 = vcmp.lt.s32.totalorder %v1624_v15, 1  ;;  %vm1646_vm9 = vcmp.lt.s32.totalorder %v1624_v15, 4 }
 0x3d2   : > { %v1629_v54 = vshrl.u32 %v4795_v35, %v1626_v53  ;;  %v1632_v55 = vshrl.u32 %v4796_v38, %v1626_v53  ;;  %v1635_v57 = vshrl.u32 %v4797_v41, %v1626_v53  ;;  %v1638_v59 = vshrl.u32 %v4798_v44, %v1626_v53 }
 0x3d3   : > { %v1641_v61 = vshrl.u32 %v4799_v47, %v1626_v53  ;;  %v1627_v6 = vshrl.u32 %v4794_v33, %v1626_v53  ;;  %vm1645_vm10 = vcmp.lt.s32.totalorder %v1624_v15, 3  ;;  %vm1644_vm11 = vcmp.lt.s32.totalorder %v1624_v15, 2 }
 0x3d4   : > { %v1630_v63 = vor.u32 %v1629_v54, %v1628_v17  ;;  %v1633_v0 = vor.u32 %v1632_v55, %v1631_v18  ;;  %v1636_v27 = vor.u32 %v1635_v57, %v1634_v56  ;;  %v1639_v1 = vor.u32 %v1638_v59, %v1637_v58 }
 0x3d5   : > { %v1642_v2 = vor.u32 %v1641_v61, %v1640_v60  ;;  %v4040_v55 = vclamps-f32 %v1459_v36, 12.0 }
 0x3d6   : > { %v1648_v3 = vsel %vm1646_vm9, %v1636_v27, 2102212464  ;;  %v1651_v4 = vsel %vm1643_vm8, %v1630_v63, %v1633_v0  ;;  %v1655_v5 = vsel %vm1643_vm8, %v1633_v0, %v1636_v27  ;;  %v1652_v7 = vsel %vm1646_vm9, %v1639_v1, 920167782 }
 0x3d7   : > { %v1656_v8 = vsel %vm1646_vm9, %v1642_v2, 1326507024  ;;  %v1653_v9 = vsel %vm1645_vm10, %v1636_v27, %v1652_v7  ;;  %v1647_v14 = vsel %vm1643_vm8, %v1627_v6, %v1630_v63  ;;  %v1649_v16 = vsel %vm1645_vm10, %v1633_v0, %v1648_v3 }
 0x3d8   : > { %v1657_v12 = vsel %vm1645_vm10, %v1639_v1, %v1656_v8  ;;  %v1654_v19 = vsel %vm1644_vm11, %v1651_v4, %v1653_v9  ;;  %v1650_v30 = vsel %vm1644_vm11, %v1647_v14, %v1649_v16  ;;  %v1602_v61 = vmul.f32 2.0, %v4040_v55 }
 0x3d9   : > { %v1658_v20 = vsel %vm1644_vm11, %v1655_v5, %v1657_v12  ;;  %v5272_v24 = vmul.u32.u64.low %v1659_v13, %v1654_v19  ;;  %v5273_v28 = vmul.u32.u64.high %v1659_v13, %v1654_v19, %v5272_v24  ;;  %v1666_v37 = vmul.u32 %v1659_v13, %v1650_v30 }
 0x3da   : > { %v5269_v11 = vmul.u32.u64.low %v1659_v13, %v1658_v20  ;;  %v5270_v22 = vmul.u32.u64.high %v1659_v13, %v1658_v20, %v5269_v11  ;;  %v1605_v62 = vmul.f32 -2.0, %v4040_v55  ;;  %v1603_v1 = vmul.f32 1.442695, %v1602_v61 }
 0x3db   : > { %v1669_v32 = vadd.s32 1, %v5273_v28  ;;  %vm1703_vm10 = vweird.f32 %v5252_v40 }
 0x3dc   : > { %vm1668_vm12 = vc.u32 %v5270_v22, %v5272_v24  ;;  %v1667_v17 = vadd.s32 %v5272_v24, %v5270_v22  ;;  %v1606_v2 = vmul.f32 1.442695, %v1605_v62  ;;  %4528 = vpow2.f32 %v1603_v1 }
 0x3dd   : > { %v1670_v39 = vsel %vm1668_vm12, %v1669_v32, %v5273_v28 }
 0x3de   : > { %v1671_v42 = vadd.s32 %v1670_v39, %v1666_v37  ;;  %4530 = vpow2.f32 %v1606_v2 }
 0x3e0   : > { %v1672_v43 = vadd.s32 536870912, %v1671_v42 }
 0x3e2   : > { %v1673_v45 = vshrl.u32 %v1672_v43, 30 }
 0x3e4   : > { %v1674_v46 = vshll.u32 %v1673_v45, 30  ;;  %v1697_v4 = vsub.s32 4, %v1673_v45 }
 0x3e6   : > { %v1675_v48 = vsub.s32 %v1671_v42, %v1674_v46  ;;  %v1698_v34 = vsel %vm1613_vm14, %v1697_v4, %v1673_v45  ;;  %v4529_v8 = vpop.eup %4528 }
 0x3e7   : > { %v1700_v6 = vsel %vm1612_vm15, 0, %v1698_v34 }
 0x3e8   : > { %v1677_v50 = vsub.s32 0, %v1675_v48  ;;  %v1812_v7 = vadd.s32 3, %v1700_v6  ;;  %v4531_v9 = vpop.eup %4530  ;;  %v1704_v12 = vand.u32 3, %v1700_v6 }
 0x3e9   : > { %v1608_v19 = vadd.f32 %v4531_v9, %v4529_v8  ;;  %v1716_v45 = vsub.f32 %v4529_v8, %v4531_v9 }
 0x3ea   : > { %v4042_v51 = vmin.u32 %v1677_v50, %v1675_v48  ;;  %v1813_v13 = vand.u32 3, %v1812_v7  ;;  %vm1709_vm3 = vcmp.eq.s32.totalorder %v1704_v12, 2  ;;  %vm1706_vm5 = vcmp.eq.s32.totalorder %v1704_v12, 0 }
 0x3eb   : > { %vm1705_vm8 = vcmp.lt.s32.totalorder %v1704_v12, 2  ;;  %v1609_v30 = vmul.f32 0.5, %v1608_v19  ;;  %v1717_v46 = vmul.f32 0.5, %v1716_v45 }
 0x3ec   : > { %v1679_v52 = vclz %v4042_v51  ;;  %vm1818_vm4 = vcmp.eq.s32.totalorder %v1813_v13, 2  ;;  %vm1815_vm7 = vcmp.eq.s32.totalorder %v1813_v13, 0  ;;  %vm1814_vm9 = vcmp.lt.s32.totalorder %v1813_v13, 2 }
 0x3ee   : > { %v4043_v53 = vadd.s32 4294967294, %v1679_v52  ;;  %v2116_v52 = vpop.permute.xlu0 %2115 }
 0x3f0   : > { %vm4044_vm13 = vcmp.lt.s32.totalorder %v4043_v53, 0 }
 0x3f1   : > { %v1682_v15 = vsel %vm4044_vm13, 0, %v4043_v53 }
 0x3f2   : > { %v1683_v18 = vsub.s32 32, %v1682_v15  ;;  %v1687_v54 = vsub.s32 4294967266, %v1682_v15  ;;  %v1684_v56 = vshll.u32 %v1675_v48, %v1682_v15  ;;  %v5307_v53 = vpop.permute.xlu0 %2193 }
 0x3f4   : > { %v1685_v57 = vshrl.u32 %v1667_v17, %v1683_v18  ;;  %v1688_v58 = vadd.s32 127, %v1687_v54 }
 0x3f6   : > { %v1686_v59 = vor.u32 %v1685_v57, %v1684_v56  ;;  %v1689_v60 = vshll.u32 %v1688_v58, 23 }
 0x3f8   : > { %v1690_v63 = vor.u32 4788187, %v1689_v60  ;;  %v1693_v27 = vcvt.s32.f32 %v1686_v59 }
 0x3fa   : > { %v1691_v0 = vand.u32 2147483647, %v1690_v63 }
 0x3fc   : > { %v1694_v3 = vmul.f32 %v1693_v27, %v1691_v0 }
 0x3fe   : > { %v1695_v5 = vxor.u32 2147483648, %v1694_v3 }
 0x400   : > { %v1696_v31 = vsel %vm1613_vm14, %v1695_v5, %v1694_v3 }
 0x401   : > { %v1699_v36 = vsel %vm1612_vm15, %v5252_v40, %v1696_v31  ;;  %v2192_v40 = vpop.permute.xlu1 %2191 }
 0x402   : > { %4532 = vcosq.f32 %v1699_v36 }
 0x403   : > { %4534 = vsinq.f32 %v1699_v36 }
 0x40c   : > { %v4533_v14 = vpop.eup %4532 }
 0x40d   : > { %v4535_v16 = vpop.eup %4534  ;;  %v1710_v20 = vxor.u32 2147483648, %v4533_v14 }
 0x40e   : > { %v1707_v11 = vxor.u32 2147483648, %v4535_v16 }
 0x40f   : > { %v1711_v49 = vsel %vm1709_vm3, %v1710_v20, %v4535_v16  ;;  %v1820_v22 = vsel %vm1818_vm4, %v1710_v20, %v4535_v16 }
 0x410   : > { %v1708_v24 = vsel %vm1706_vm5, %v4533_v14, %v1707_v11  ;;  %v1817_v28 = vsel %vm1815_vm7, %v4533_v14, %v1707_v11 }
 0x411   : > { %v1712_v32 = vsel %vm1705_vm8, %v1708_v24, %v1711_v49  ;;  %v1821_v37 = vsel %vm1814_vm9, %v1817_v28, %v1820_v22 }
 0x412   : > { %v1713_v39 = vsel %vm1703_vm10, nan, %v1712_v32  ;;  %v1822_v42 = vsel %vm1703_vm10, nan, %v1821_v37 }
 0x413   : > { %v1714_v43 = vadd.f32 %v1713_v39, %v1609_v30 }
 0x415   : > { %4536 = vrcp.f32 %v1714_v43 }
 0x41f   : > { %v4537_v48 = vpop.eup %4536 }
 0x420   : > { %v1718_v50 = vmul.f32 %v4537_v48, %v1717_v46  ;;  %v1823_v51 = vmul.f32 %v4537_v48, %v1822_v42 }
 0x422   : > { %4258 = vmatmul.mubr.msk.f32.vlgmr.msra.gmra.mrb[12].mxu1 %vm1015_vm6, %v1718_v50  ;;  %4268 = vmatmul.mubr.msk.f32.vlgmr.msra.gmra.mrb[10].mxu0 %vm1015_vm6, %v1823_v51 }
 0x423   : > { %4261 = vmatpush3.msra.mxu1 %v5206_v21  ;;  %4271 = vmatpush3.msra.mxu0 %v5206_v21  ;;  %v2114_v21 = vpop.permute.xlu1 %2113 }
 0x424   : > { %4262 = vmatprep.mubr.msk.f32.mxu1 %vm4790_vm1, %v4789_v10  ;;  %4275 = vmatprep.subr.mxu1 %v4789_v10 }
 0x425   : > { %4272 = vmatprep.mubr.msk.f32.mxu0 %vm4790_vm1, %v4789_v10  ;;  %4285 = vmatprep.subr.mxu0 %v4789_v10 }
 0x426   : > { %4263 = vmatmul.mubr.msk.f32.vlgmr.msra.gmra.mrb[14].mxu1 %vm1015_vm6, %v1823_v51 }
 0x427   : > { %4277 = vmatprep.mubr.msk.f32.mxu1 %vm4790_vm1, %v4789_v10 }
 0x42a   : > { %4276 = vmatpush3.xpose.msk.msra.mxu1 %vm497_vm2, %v2116_v52  ;;  %4273 = vmatmul.mubr.msk.f32.vlgmr.msra.gmra.mrb[10].mxu0 %vm1015_vm6, %v1718_v50 }
 0x42b   : > { %4286 = vmatpush3.xpose.msk.msra.mxu0 %vm497_vm2, %v2116_v52  ;;  %4280 = vmatprep.subr.mxu1 %v4789_v10 }
 0x42c   : > { %4287 = vmatprep.mubr.msk.f32.mxu0 %vm4790_vm1, %v4789_v10  ;;  %4290 = vmatprep.subr.mxu0 %v4789_v10 }
 0x42d   : > { %4278 = vmatmul.mubr.msk.f32.vlgmr.msra.gmra.mrb[16].mxu1 %vm497_vm2, %v2114_v21 }
 0x42e   : > { %4281 = vmatpush3.xpose.msk.msra.mxu1 %vm497_vm2, %v5307_v53  ;;  %4288 = vmatmul.mubr.msk.f32.vlgmr.msra.gmra.mrb[12].mxu0 %vm497_vm2, %v2192_v40 }
 0x42f   : > { %4291 = vmatpush3.xpose.msk.msra.mxu0 %vm497_vm2, %v5307_v53  ;;  %4282 = vmatprep.mubr.msk.f32.mxu1 %vm4790_vm1, %v4789_v10 }
 0x430   : > { %4295 = vmatprep.subr.mxu1 %v4789_v10  ;;  %4292 = vmatprep.mubr.msk.f32.mxu0 %vm4790_vm1, %v4789_v10 }
 0x431   : > { %4283 = vmatmul.mubr.msk.f32.vlgmr.msra.gmra.mrb[18].mxu1 %vm497_vm2, %v2192_v40  ;;  %4305 = vmatprep.subr.mxu0 %v4789_v10 }
 0x432   : > { %4296 = vmatpush3.msra.mxu1 %v2116_v52  ;;  %4297 = vmatprep.mubr.msk.f32.mxu1 %vm4790_vm1, %v4789_v10 }
 0x433   : > { %4300 = vmatprep.subr.mxu1 %v4789_v10 }
 0x436   : > { %4293 = vmatmul.mubr.msk.f32.vlgmr.msra.gmra.mrb[12].mxu0 %vm497_vm2, %v2114_v21 }
 0x437   : > { %4306 = vmatpush3.msra.mxu0 %v2116_v52  ;;  %4307 = vmatprep.mubr.msk.f32.mxu0 %vm4790_vm1, %v4789_v10 }
 0x438   : > { %4310 = vmatprep.subr.mxu0 %v4789_v10 }
 0x4f5   : > { %v1894_v15 = vpop.f32.mrb[12].mxu1 }
 0x4f6   : > { %v4259_v17 = vpop.f32.mrb[13].mxu1 }
 0x4f9   : > { %v1968_v18 = vpop.f32.mrb[14].mxu1 }
 0x4fa   : > { %v1972_v54 = vsub.f32 %v1894_v15, %v1968_v18  ;;  %v4264_v55 = vpop.f32.mrb[15].mxu1 }
 0x4fd   : > { %v2109_v56 = vpop.f32.mrb[10].mxu0 }
 0x4fe   : > { %v4503_v57 = vpack.i.bf16 %v2109_v56, %v1972_v54  ;;  %v4274_v58 = vpop.f32.mrb[11].mxu0 }
 0x500   : > { %v5329_v59 = vpop.f32.mrb[16].mxu1  ;;  %4504 = vrot.lane.b32.xlu0 %v4503_v57, %s4793_s29 }
 0x501   : > { %v4279_v60 = vpop.f32.mrb[17].mxu1 }
 0x504   : > { %v5332_v61 = vpop.f32.mrb[18].mxu1 }
 0x505   : > { %v2269_v62 = vsub.f32 %v5329_v59, %v5332_v61  ;;  %v4284_v63 = vpop.f32.mrb[19].mxu1 }
 0x509   : > { %v2406_v0 = vpop.f32.mrb[12].mxu0 }
 0x50a   : > { %v5336_v27 = vmul.f32 2.0, %v2406_v0  ;;  %v4294_v1 = vpop.f32.mrb[13].mxu0 }
 0x50c   : > { %v2424_v2 = vand.u32 2139095040, %v5336_v27  ;;  %v2421_v31 = vand.u32 2147483647, %v5336_v27  ;;  %vm2423_vm5 = vcmp.lt.s32.totalorder %v5336_v27, 0 }
 0x50e   : > { %v2425_v3 = vshrl.u32 %v2424_v2, 23  ;;  %v2428_v6 = vand.u32 8388607, %v2421_v31  ;;  %vm2422_vm7 = vcmp.le.f32.partialorder %v2421_v31, 0.7853982 }
 0x510   : > { %v4062_v4 = vadd.s32 4294967169, %v2425_v3  ;;  %v2429_v24 = vor.u32 8388608, %v2428_v6 }
 0x512   : > { %v2431_v5 = vadd.s32 1, %v4062_v4  ;;  %v2469_v52 = vshll.u32 %v2429_v24, 8 }
 0x514   : > { %vm2432_vm11 = vcmp.gt.s32.totalorder %v2431_v5, 0 }
 0x515   : > { %v2433_v34 = vsel %vm2432_vm11, %v2431_v5, 0 }
 0x516   : > { %v2435_v36 = vand.u32 31, %v2433_v34  ;;  %v2434_v8 = vshrl.u32 %v2433_v34, 5 }
 0x518   : > { %v2436_v7 = vsub.s32 32, %v2435_v36  ;;  %v2438_v9 = vshll.u32 %v4794_v33, %v2435_v36  ;;  %v2441_v12 = vshll.u32 %v4795_v35, %v2435_v36  ;;  %v2444_v16 = vshll.u32 %v4796_v38, %v2435_v36 }
 0x519   : > { %v2447_v20 = vshll.u32 %v4797_v41, %v2435_v36  ;;  %v2450_v49 = vshll.u32 %v4798_v44, %v2435_v36  ;;  %vm2453_vm12 = vcmp.lt.s32.totalorder %v2434_v8, 1  ;;  %vm2456_vm13 = vcmp.lt.s32.totalorder %v2434_v8, 4 }
 0x51a   : > { %v2439_v13 = vshrl.u32 %v4795_v35, %v2436_v7  ;;  %v2442_v14 = vshrl.u32 %v4796_v38, %v2436_v7  ;;  %v2445_v19 = vshrl.u32 %v4797_v41, %v2436_v7  ;;  %v2448_v11 = vshrl.u32 %v4798_v44, %v2436_v7 }
 0x51b   : > { %v2451_v22 = vshrl.u32 %v4799_v47, %v2436_v7  ;;  %v2437_v46 = vshrl.u32 %v4794_v33, %v2436_v7  ;;  %vm2455_vm14 = vcmp.lt.s32.totalorder %v2434_v8, 3  ;;  %vm2454_vm15 = vcmp.lt.s32.totalorder %v2434_v8, 2 }
 0x51c   : > { %v2440_v28 = vor.u32 %v2439_v13, %v2438_v9  ;;  %v2443_v30 = vor.u32 %v2442_v14, %v2441_v12  ;;  %v2446_v32 = vor.u32 %v2445_v19, %v2444_v16  ;;  %v2449_v37 = vor.u32 %v2448_v11, %v2447_v20 }
 0x51d   : > { %v2452_v39 = vor.u32 %v2451_v22, %v2450_v49  ;;  %v4061_v14 = vclamps-f32 %v2269_v62, 12.0 }
 0x51e   : > { %v2458_v42 = vsel %vm2456_vm13, %v2446_v32, 2102212464  ;;  %v2461_v43 = vsel %vm2453_vm12, %v2440_v28, %v2443_v30  ;;  %v2465_v45 = vsel %vm2453_vm12, %v2443_v30, %v2446_v32  ;;  %v2462_v48 = vsel %vm2456_vm13, %v2449_v37, 920167782 }
 0x51f   : > { %v2466_v50 = vsel %vm2456_vm13, %v2452_v39, 1326507024  ;;  %v2463_v51 = vsel %vm2455_vm14, %v2446_v32, %v2462_v48  ;;  %v2457_v21 = vsel %vm2453_vm12, %v2437_v46, %v2440_v28  ;;  %v2459_v15 = vsel %vm2455_vm14, %v2443_v30, %v2458_v42 }
 0x520   : > { %v2467_v40 = vsel %vm2455_vm14, %v2449_v37, %v2466_v50  ;;  %v2464_v17 = vsel %vm2454_vm15, %v2461_v43, %v2463_v51  ;;  %v2460_v58 = vsel %vm2454_vm15, %v2457_v21, %v2459_v15  ;;  %v2412_v22 = vmul.f32 2.0, %v4061_v14 }
 0x521   : > { %v2468_v18 = vsel %vm2454_vm15, %v2465_v45, %v2467_v40  ;;  %v5356_v56 = vmul.u32.u64.low %v2469_v52, %v2464_v17  ;;  %v5357_v57 = vmul.u32.u64.high %v2469_v52, %v2464_v17, %v5356_v56  ;;  %v2476_v63 = vmul.u32 %v2469_v52, %v2460_v58 }
 0x522   : > { %v5353_v54 = vmul.u32.u64.low %v2469_v52, %v2468_v18  ;;  %v5354_v55 = vmul.u32.u64.high %v2469_v52, %v2468_v18, %v5353_v54  ;;  %v2415_v24 = vmul.f32 -2.0, %v4061_v14  ;;  %v2413_v37 = vmul.f32 1.442695, %v2412_v22 }
 0x523   : > { %v2479_v60 = vadd.s32 1, %v5357_v57  ;;  %vm2513_vm14 = vweird.f32 %v5336_v27 }
 0x524   : > { %vm2478_vm3 = vc.u32 %v5354_v55, %v5356_v56  ;;  %v2477_v9 = vadd.s32 %v5356_v56, %v5354_v55  ;;  %v2416_v39 = vmul.f32 1.442695, %v2415_v24  ;;  %4538 = vpow2.f32 %v2413_v37 }
 0x525   : > { %v2480_v0 = vsel %vm2478_vm3, %v2479_v60, %v5357_v57 }
 0x526   : > { %v2481_v1 = vadd.s32 %v2480_v0, %v2476_v63  ;;  %4540 = vpow2.f32 %v2416_v39 }
 0x528   : > { %v2482_v2 = vadd.s32 536870912, %v2481_v1 }
 0x52a   : > { %v2483_v3 = vshrl.u32 %v2482_v2, 30 }
 0x52c   : > { %v2484_v4 = vshll.u32 %v2483_v3, 30  ;;  %v2507_v43 = vsub.s32 4, %v2483_v3 }
 0x52e   : > { %v2485_v5 = vsub.s32 %v2481_v1, %v2484_v4  ;;  %v2508_v61 = vsel %vm2423_vm5, %v2507_v43, %v2483_v3  ;;  %v4539_v50 = vpop.eup %4538 }
 0x52f   : > { %v2510_v46 = vsel %vm2422_vm7, 0, %v2508_v61 }
 0x530   : > { %v2487_v34 = vsub.s32 0, %v2485_v5  ;;  %v2622_v48 = vadd.s32 3, %v2510_v46  ;;  %v4541_v51 = vpop.eup %4540  ;;  %v2514_v40 = vand.u32 3, %v2510_v46 }
 0x531   : > { %v2418_v17 = vadd.f32 %v4541_v51, %v4539_v50  ;;  %v2526_v3 = vsub.f32 %v4539_v50, %v4541_v51 }
 0x532   : > { %v4063_v36 = vmin.u32 %v2487_v34, %v2485_v5  ;;  %v2623_v52 = vand.u32 3, %v2622_v48  ;;  %vm2519_vm8 = vcmp.eq.s32.totalorder %v2514_v40, 2  ;;  %vm2516_vm10 = vcmp.eq.s32.totalorder %v2514_v40, 0 }
 0x533   : > { %vm2515_vm12 = vcmp.lt.s32.totalorder %v2514_v40, 2  ;;  %v2419_v58 = vmul.f32 0.5, %v2418_v17  ;;  %v2527_v4 = vmul.f32 0.5, %v2526_v3 }
 0x534   : > { %v2489_v6 = vclz %v4063_v36  ;;  %vm2628_vm9 = vcmp.eq.s32.totalorder %v2623_v52, 2  ;;  %vm2625_vm11 = vcmp.eq.s32.totalorder %v2623_v52, 0  ;;  %vm2624_vm13 = vcmp.lt.s32.totalorder %v2623_v52, 2 }
 0x536   : > { %v4064_v7 = vadd.s32 4294967294, %v2489_v6  ;;  %v2926_v6 = vpop.permute.xlu0 %2925 }
 0x538   : > { %vm4065_vm4 = vcmp.lt.s32.totalorder %v4064_v7, 0 }
 0x539   : > { %v2492_v8 = vsel %vm4065_vm4, 0, %v4064_v7 }
 0x53a   : > { %v2493_v12 = vsub.s32 32, %v2492_v8  ;;  %v2497_v13 = vsub.s32 4294967266, %v2492_v8  ;;  %v2494_v16 = vshll.u32 %v2485_v5, %v2492_v8  ;;  %v5391_v7 = vpop.permute.xlu0 %3003 }
 0x53c   : > { %v2495_v19 = vshrl.u32 %v2477_v9, %v2493_v12  ;;  %v2498_v20 = vadd.s32 127, %v2497_v13 }
 0x53e   : > { %v2496_v11 = vor.u32 %v2495_v19, %v2494_v16  ;;  %v2499_v49 = vshll.u32 %v2498_v20, 23 }
 0x540   : > { %v2500_v28 = vor.u32 4788187, %v2499_v49  ;;  %v2503_v32 = vcvt.s32.f32 %v2496_v11 }
 0x542   : > { %v2501_v30 = vand.u32 2147483647, %v2500_v28 }
 0x544   : > { %v2504_v42 = vmul.f32 %v2503_v32, %v2501_v30 }
 0x546   : > { %v2505_v45 = vxor.u32 2147483648, %v2504_v42 }
 0x548   : > { %v2506_v59 = vsel %vm2423_vm5, %v2505_v45, %v2504_v42 }
 0x549   : > { %v2509_v62 = vsel %vm2422_vm7, %v5336_v27, %v2506_v59  ;;  %v3002_v27 = vpop.permute.xlu1 %3001 }
 0x54a   : > { %4542 = vcosq.f32 %v2509_v62 }
 0x54b   : > { %4544 = vsinq.f32 %v2509_v62 }
 0x554   : > { %v4543_v21 = vpop.eup %4542 }
 0x555   : > { %v4545_v15 = vpop.eup %4544  ;;  %v2520_v18 = vxor.u32 2147483648, %v4543_v21 }
 0x556   : > { %v2517_v54 = vxor.u32 2147483648, %v4545_v15 }
 0x557   : > { %v2521_v31 = vsel %vm2519_vm8, %v2520_v18, %v4545_v15  ;;  %v2630_v55 = vsel %vm2628_vm9, %v2520_v18, %v4545_v15 }
 0x558   : > { %v2518_v56 = vsel %vm2516_vm10, %v4543_v21, %v2517_v54  ;;  %v2627_v57 = vsel %vm2625_vm11, %v4543_v21, %v2517_v54 }
 0x559   : > { %v2522_v60 = vsel %vm2515_vm12, %v2518_v56, %v2521_v31  ;;  %v2631_v63 = vsel %vm2624_vm13, %v2627_v57, %v2630_v55 }
 0x55a   : > { %v2523_v0 = vsel %vm2513_vm14, nan, %v2522_v60  ;;  %v2632_v1 = vsel %vm2513_vm14, nan, %v2631_v63 }
 0x55b   : > { %v2524_v2 = vadd.f32 %v2523_v0, %v2419_v58 }
 0x55d   : > { %4546 = vrcp.f32 %v2524_v2 }
 0x567   : > { %v4547_v5 = vpop.eup %4546 }
 0x568   : > { %v2528_v34 = vmul.f32 %v4547_v5, %v2527_v4  ;;  %v2633_v36 = vmul.f32 %v4547_v5, %v2632_v1 }
 0x56a   : > { %4298 = vmatmul.mubr.msk.f32.vlgmr.msra.gmra.mrb[20].mxu1 %vm1015_vm6, %v2528_v34  ;;  %4308 = vmatmul.mubr.msk.f32.vlgmr.msra.gmra.mrb[14].mxu0 %vm1015_vm6, %v2633_v36 }
 0x56b   : > { %4301 = vmatpush3.msra.mxu1 %v5307_v53  ;;  %4311 = vmatpush3.msra.mxu0 %v5307_v53  ;;  %v2924_v53 = vpop.permute.xlu1 %2923 }
 0x56c   : > { %4302 = vmatprep.mubr.msk.f32.mxu1 %vm4790_vm1, %v4789_v10  ;;  %4315 = vmatprep.subr.mxu1 %v4789_v10 }
 0x56d   : > { %4312 = vmatprep.mubr.msk.f32.mxu0 %vm4790_vm1, %v4789_v10  ;;  %4325 = vmatprep.subr.mxu0 %v4789_v10 }
 0x56e   : > { %4303 = vmatmul.mubr.msk.f32.vlgmr.msra.gmra.mrb[22].mxu1 %vm1015_vm6, %v2633_v36 }
 0x56f   : > { %4317 = vmatprep.mubr.msk.f32.mxu1 %vm4790_vm1, %v4789_v10 }
 0x572   : > { %4316 = vmatpush3.xpose.msk.msra.mxu1 %vm497_vm2, %v2926_v6  ;;  %4313 = vmatmul.mubr.msk.f32.vlgmr.msra.gmra.mrb[14].mxu0 %vm1015_vm6, %v2528_v34 }
 0x573   : > { %4326 = vmatpush3.xpose.msk.msra.mxu0 %vm497_vm2, %v2926_v6  ;;  %4320 = vmatprep.subr.mxu1 %v4789_v10 }
 0x574   : > { %4327 = vmatprep.mubr.msk.f32.mxu0 %vm4790_vm1, %v4789_v10  ;;  %4330 = vmatprep.subr.mxu0 %v4789_v10 }
 0x575   : > { %4318 = vmatmul.mubr.msk.f32.vlgmr.msra.gmra.mrb[24].mxu1 %vm497_vm2, %v2924_v53 }
 0x576   : > { %4321 = vmatpush3.xpose.msk.msra.mxu1 %vm497_vm2, %v5391_v7  ;;  %4328 = vmatmul.mubr.msk.f32.vlgmr.msra.gmra.mrb[16].mxu0 %vm497_vm2, %v3002_v27 }
 0x577   : > { %4331 = vmatpush3.xpose.msk.msra.mxu0 %vm497_vm2, %v5391_v7  ;;  %4322 = vmatprep.mubr.msk.f32.mxu1 %vm4790_vm1, %v4789_v10 }
 0x578   : > { %4335 = vmatprep.subr.mxu1 %v4789_v10  ;;  %4332 = vmatprep.mubr.msk.f32.mxu0 %vm4790_vm1, %v4789_v10 }
 0x579   : > { %4323 = vmatmul.mubr.msk.f32.vlgmr.msra.gmra.mrb[26].mxu1 %vm497_vm2, %v3002_v27  ;;  %4345 = vmatprep.subr.mxu0 %v4789_v10 }
 0x57a   : > { %4336 = vmatpush3.msra.mxu1 %v2926_v6  ;;  %4337 = vmatprep.mubr.msk.f32.mxu1 %vm4790_vm1, %v4789_v10 }
 0x57b   : > { %4340 = vmatprep.subr.mxu1 %v4789_v10 }
 0x57e   : > { %4333 = vmatmul.mubr.msk.f32.vlgmr.msra.gmra.mrb[16].mxu0 %vm497_vm2, %v2924_v53 }
 0x57f   : > { %4346 = vmatpush3.msra.mxu0 %v2926_v6  ;;  %4347 = vmatprep.mubr.msk.f32.mxu0 %vm4790_vm1, %v4789_v10 }
 0x580   : > { %4350 = vmatprep.subr.mxu0 %v4789_v10 }
 0x63d   : > { %v2704_v8 = vpop.f32.mrb[20].mxu1 }
 0x63e   : > { %v4299_v9 = vpop.f32.mrb[21].mxu1 }
 0x641   : > { %v2778_v12 = vpop.f32.mrb[22].mxu1 }
 0x642   : > { %v2782_v13 = vsub.f32 %v2704_v8, %v2778_v12  ;;  %v4304_v14 = vpop.f32.mrb[23].mxu1 }
 0x645   : > { %v2919_v16 = vpop.f32.mrb[14].mxu0 }
 0x646   : > { %v4508_v19 = vpack.i.bf16 %v2919_v16, %v2782_v13  ;;  %v4314_v20 = vpop.f32.mrb[15].mxu0 }
 0x648   : > { %v5413_v11 = vpop.f32.mrb[24].mxu1  ;;  %4509 = vrot.lane.b32.xlu1 %v4508_v19, %s4792_s27 }
 0x649   : > { %v4319_v49 = vpop.f32.mrb[25].mxu1 }
 0x64c   : > { %v5416_v22 = vpop.f32.mrb[26].mxu1 }
 0x64d   : > { %v3079_v24 = vsub.f32 %v5413_v11, %v5416_v22  ;;  %v4324_v28 = vpop.f32.mrb[27].mxu1 }
 0x651   : > { %v3216_v30 = vpop.f32.mrb[16].mxu0 }
 0x652   : > { %v5420_v32 = vmul.f32 2.0, %v3216_v30  ;;  %v4334_v37 = vpop.f32.mrb[17].mxu0 }
 0x654   : > { %v3234_v39 = vand.u32 2139095040, %v5420_v32  ;;  %v3231_v59 = vand.u32 2147483647, %v5420_v32  ;;  %vm3233_vm10 = vcmp.lt.s32.totalorder %v5420_v32, 0 }
 0x656   : > { %v3235_v42 = vshrl.u32 %v3234_v39, 23  ;;  %v3238_v46 = vand.u32 8388607, %v3231_v59  ;;  %vm3232_vm11 = vcmp.le.f32.partialorder %v3231_v59, 0.7853982 }
 0x658   : > { %v4083_v43 = vadd.s32 4294967169, %v3235_v42  ;;  %v3239_v56 = vor.u32 8388608, %v3238_v46  ;;  %v4082_v46 = vclamps-f32 %v3079_v24, 12.0 }
 0x65a   : > { %v3241_v45 = vadd.s32 1, %v4083_v43 }
 0x65c   : > { %vm3242_vm15 = vcmp.gt.s32.totalorder %v3241_v45, 0 }
 0x65d   : > { %v3243_v61 = vsel %vm3242_vm15, %v3241_v45, 0 }
 0x65e   : > { %v3245_v62 = vand.u32 31, %v3243_v61  ;;  %v3244_v50 = vshrl.u32 %v3243_v61, 5 }
 0x660   : > { %v3246_v48 = vsub.s32 32, %v3245_v62  ;;  %v3248_v51 = vshll.u32 %v4794_v33, %v3245_v62  ;;  %v3251_v40 = vshll.u32 %v4795_v35, %v3245_v62  ;;  %v3254_v15 = vshll.u32 %v4796_v38, %v3245_v62 }
 0x661   : > { %v3257_v18 = vshll.u32 %v4797_v41, %v3245_v62  ;;  %v3260_v31 = vshll.u32 %v4798_v44, %v3245_v62  ;;  %vm3263_vm3 = vcmp.lt.s32.totalorder %v3244_v50, 1  ;;  %vm3266_vm4 = vcmp.lt.s32.totalorder %v3244_v50, 4 }
 0x662   : > { %v3249_v52 = vshrl.u32 %v4795_v35, %v3246_v48  ;;  %v3252_v21 = vshrl.u32 %v4796_v38, %v3246_v48  ;;  %v3255_v17 = vshrl.u32 %v4797_v41, %v3246_v48  ;;  %v3258_v54 = vshrl.u32 %v4798_v44, %v3246_v48 }
 0x663   : > { %v3261_v55 = vshrl.u32 %v4799_v47, %v3246_v48  ;;  %v3247_v2 = vshrl.u32 %v4794_v33, %v3246_v48  ;;  %vm3265_vm5 = vcmp.lt.s32.totalorder %v3244_v50, 3  ;;  %vm3264_vm7 = vcmp.lt.s32.totalorder %v3244_v50, 2 }
 0x664   : > { %v3250_v57 = vor.u32 %v3249_v52, %v3248_v51  ;;  %v3253_v58 = vor.u32 %v3252_v21, %v3251_v40  ;;  %v3256_v60 = vor.u32 %v3255_v17, %v3254_v15  ;;  %v3259_v63 = vor.u32 %v3258_v54, %v3257_v18 }
 0x665   : > { %v3262_v35 = vor.u32 %v3261_v55, %v3260_v31  ;;  %v3279_v47 = vshll.u32 %v3239_v56, 8  ;;  %v3222_v21 = vmul.f32 2.0, %v4082_v46  ;;  %v3225_v15 = vmul.f32 -2.0, %v4082_v46 }
 0x666   : > { %v3268_v0 = vsel %vm3266_vm4, %v3256_v60, 2102212464  ;;  %v3271_v38 = vsel %vm3263_vm3, %v3250_v57, %v3253_v58  ;;  %v3275_v1 = vsel %vm3263_vm3, %v3253_v58, %v3256_v60  ;;  %v3272_v41 = vsel %vm3266_vm4, %v3259_v63, 920167782 }
 0x667   : > { %v3276_v3 = vsel %vm3266_vm4, %v3262_v35, 1326507024  ;;  %v3273_v44 = vsel %vm3265_vm5, %v3256_v60, %v3272_v41  ;;  %v3267_v5 = vsel %vm3263_vm3, %v3247_v2, %v3250_v57  ;;  %v3269_v34 = vsel %vm3265_vm5, %v3253_v58, %v3268_v0 }
 0x668   : > { %v3277_v4 = vsel %vm3265_vm5, %v3259_v63, %v3276_v3  ;;  %v3274_v36 = vsel %vm3264_vm7, %v3271_v38, %v3273_v44  ;;  %v3270_v12 = vsel %vm3264_vm7, %v3267_v5, %v3269_v34  ;;  %v3223_v31 = vmul.f32 1.442695, %v3222_v21 }
 0x669   : > { %v3278_v27 = vsel %vm3264_vm7, %v3275_v1, %v3277_v4  ;;  %v5440_v8 = vmul.u32.u64.low %v3279_v47, %v3274_v36  ;;  %v5441_v9 = vmul.u32.u64.high %v3279_v47, %v3274_v36, %v5440_v8  ;;  %v3286_v13 = vmul.u32 %v3279_v47, %v3270_v12 }
 0x66a   : > { %v5437_v6 = vmul.u32.u64.low %v3279_v47, %v3278_v27  ;;  %v5438_v53 = vmul.u32.u64.high %v3279_v47, %v3278_v27, %v5437_v6  ;;  %v3226_v55 = vmul.f32 1.442695, %v3225_v15  ;;  %4548 = vpow2.f32 %v3223_v31 }
 0x66b   : > { %v3289_v33 = vadd.s32 1, %v5441_v9  ;;  %vm3323_vm5 = vweird.f32 %v5420_v32 }
 0x66c   : > { %vm3288_vm8 = vc.u32 %v5438_v53, %v5440_v8  ;;  %v3287_v45 = vadd.s32 %v5440_v8, %v5438_v53  ;;  %4550 = vpow2.f32 %v3226_v55 }
 0x66d   : > { %v3290_v14 = vsel %vm3288_vm8, %v3289_v33, %v5441_v9 }
 0x66e   : > { %v3291_v16 = vadd.s32 %v3290_v14, %v3286_v13 }
 0x670   : > { %v3292_v19 = vadd.s32 536870912, %v3291_v16 }
 0x672   : > { %v3293_v20 = vshrl.u32 %v3292_v19, 30 }
 0x674   : > { %v3294_v49 = vshll.u32 %v3293_v20, 30  ;;  %v3317_v57 = vsub.s32 4, %v3293_v20  ;;  %v4549_v35 = vpop.eup %4548 }
 0x676   : > { %v3295_v28 = vsub.s32 %v3291_v16, %v3294_v49  ;;  %v3318_v22 = vsel %vm3233_vm10, %v3317_v57, %v3293_v20  ;;  %v4551_v0 = vpop.eup %4550  ;;  %v3765_v49 = vld [vmem:[#allocation10] sm:$0xff] }
 0x677   : > { %v3320_v60 = vsel %vm3232_vm11, 0, %v3318_v22  ;;  %v3228_v3 = vadd.f32 %v4551_v0, %v4549_v35  ;;  %v3336_v12 = vsub.f32 %v4549_v35, %v4551_v0 }
 0x678   : > { %v3297_v30 = vsub.s32 0, %v3295_v28  ;;  %v3432_v63 = vadd.s32 3, %v3320_v60  ;;  %v3324_v38 = vand.u32 3, %v3320_v60 }
 0x679   : > { %v3229_v36 = vmul.f32 0.5, %v3228_v3  ;;  %v3337_v33 = vmul.f32 0.5, %v3336_v12 }
 0x67a   : > { %v4084_v37 = vmin.u32 %v3297_v30, %v3295_v28  ;;  %v3433_v1 = vand.u32 3, %v3432_v63  ;;  %vm3329_vm12 = vcmp.eq.s32.totalorder %v3324_v38, 2  ;;  %vm3326_vm14 = vcmp.eq.s32.totalorder %v3324_v38, 0 }
 0x67b   : > { %vm3325_vm3 = vcmp.lt.s32.totalorder %v3324_v38, 2 }
 0x67c   : > { %v3299_v39 = vclz %v4084_v37  ;;  %vm3438_vm13 = vcmp.eq.s32.totalorder %v3433_v1, 2  ;;  %vm3435_vm15 = vcmp.eq.s32.totalorder %v3433_v1, 0  ;;  %vm3434_vm4 = vcmp.lt.s32.totalorder %v3433_v1, 2 }
 0x67e   : > { %v4085_v42 = vadd.s32 4294967294, %v3299_v39 }
 0x680   : > { %vm4086_vm9 = vcmp.lt.s32.totalorder %v4085_v42, 0 }
 0x681   : > { %v3302_v43 = vsel %vm4086_vm9, 0, %v4085_v42  ;;  %v4505_v42 = vpop.permute.xlu0 %4504 }
 0x682   : > { %v3303_v61 = vsub.s32 32, %v3302_v43  ;;  %v3307_v62 = vsub.s32 4294967266, %v3302_v43  ;;  %v3304_v48 = vshll.u32 %v3295_v28, %v3302_v43 }
 0x684   : > { %v3305_v50 = vshrl.u32 %v3287_v45, %v3303_v61  ;;  %v3308_v51 = vadd.s32 127, %v3307_v62  ;;  %v4506_v45 = vunpack.i.l.bf16 %v4505_v42 }
 0x686   : > { %v3306_v40 = vor.u32 %v3305_v50, %v3304_v48  ;;  %v3309_v52 = vshll.u32 %v3308_v51, 23  ;;  %v3745_v50 = vsel %vm497_vm2, %v1162_v26, %v4506_v45 }
 0x688   : > { %v3310_v17 = vor.u32 4788187, %v3309_v52  ;;  %v3313_v54 = vcvt.s32.f32 %v3306_v40 }
 0x68a   : > { %v3311_v18 = vand.u32 2147483647, %v3310_v17 }
 0x68c   : > { %v3314_v56 = vmul.f32 %v3313_v54, %v3311_v18  ;;  %v3766_v54 = vld [vmem:[#allocation10 + $0x8] sm:$0xff] }
 0x68e   : > { %v3315_v58 = vxor.u32 2147483648, %v3314_v56 }
 0x690   : > { %v3316_v11 = vsel %vm3233_vm10, %v3315_v58, %v3314_v56 }
 0x691   : > { %v3319_v24 = vsel %vm3232_vm11, %v5420_v32, %v3316_v11 }
 0x692   : > { %4552 = vcosq.f32 %v3319_v24 }
 0x693   : > { %4554 = vsinq.f32 %v3319_v24 }
 0x69c   : > { %v4553_v2 = vpop.eup %4552 }
 0x69d   : > { %v4555_v41 = vpop.eup %4554  ;;  %v3330_v44 = vxor.u32 2147483648, %v4553_v2 }
 0x69e   : > { %v3327_v4 = vxor.u32 2147483648, %v4555_v41 }
 0x69f   : > { %v3331_v59 = vsel %vm3329_vm12, %v3330_v44, %v4555_v41  ;;  %v3440_v47 = vsel %vm3438_vm13, %v3330_v44, %v4555_v41 }
 0x6a0   : > { %v3328_v5 = vsel %vm3326_vm14, %v4553_v2, %v3327_v4  ;;  %v3437_v34 = vsel %vm3435_vm15, %v4553_v2, %v3327_v4 }
 0x6a1   : > { %v3332_v27 = vsel %vm3325_vm3, %v3328_v5, %v3331_v59  ;;  %v3441_v6 = vsel %vm3434_vm4, %v3437_v34, %v3440_v47 }
 0x6a2   : > { %v3333_v53 = vsel %vm3323_vm5, nan, %v3332_v27  ;;  %v3442_v8 = vsel %vm3323_vm5, nan, %v3441_v6 }
 0x6a3   : > { %v3334_v9 = vadd.f32 %v3333_v53, %v3229_v36 }
 0x6a5   : > { %4556 = vrcp.f32 %v3334_v9 }
 0x6af   : > { %v4557_v13 = vpop.eup %4556 }
 0x6b0   : > { %v3338_v14 = vmul.f32 %v4557_v13, %v3337_v33  ;;  %v3443_v16 = vmul.f32 %v4557_v13, %v3442_v8 }
 0x6b2   : > { %4338 = vmatmul.mubr.msk.f32.vlgmr.msra.gmra.mrb[28].mxu1 %vm1015_vm6, %v3338_v14  ;;  %4348 = vmatmul.mubr.msk.f32.vlgmr.msra.gmra.mrb[18].mxu0 %vm1015_vm6, %v3443_v16 }
 0x6b3   : > { %4341 = vmatpush3.msra.mxu1 %v5391_v7  ;;  %4351 = vmatpush3.msra.mxu0 %v5391_v7 }
 0x6b4   : > { %4342 = vmatprep.mubr.msk.f32.mxu1 %vm4790_vm1, %v4789_v10  ;;  %4352 = vmatprep.mubr.msk.f32.mxu0 %vm4790_vm1, %v4789_v10  ;;  %v4507_v10 = vunpack.i.h.bf16 %v4505_v42  ;;  %vm3746_vm1 = vcmask 523264  }
 0x6b6   : > { %4343 = vmatmul.mubr.msk.f32.vlgmr.msra.gmra.mrb[30].mxu1 %vm1015_vm6, %v3443_v16  ;;  %v3762_v48 = vsel %vm497_vm2, %v5244_v29, %v4507_v10 }
 0x6b7   : > { %4359 = vmatprep.mubr.msk.f32.mxu1 %vm332_vm0, %v3765_v49 }
 0x6ba   : > { %4353 = vmatmul.mubr.msk.f32.vlgmr.msra.gmra.mrb[18].mxu0 %vm1015_vm6, %v3338_v14  ;;  %v4510_v43 = vpop.permute.xlu1 %4509  ;;  %vm3748_vm6 = vcmask 785408  }
 0x6bb   : > { %v4512_v61 = vunpack.i.h.bf16 %v4510_v43  ;;  %v4511_v62 = vunpack.i.l.bf16 %v4510_v43 }
 0x6bd   : > { %v3763_v52 = vsel %vm3746_vm1, %v3762_v48, %v4512_v61  ;;  %v3747_v21 = vsel %vm3746_vm1, %v3745_v50, %v4511_v62 }
 0x785   : > { %v3514_v32 = vpop.f32.mrb[28].mxu1 }
 0x786   : > { %v4339_v19 = vpop.f32.mrb[29].mxu1 }
 0x789   : > { %v3588_v20 = vpop.f32.mrb[30].mxu1 }
 0x78a   : > { %v3592_v28 = vsub.f32 %v3514_v32, %v3588_v20  ;;  %v4344_v30 = vpop.f32.mrb[31].mxu1 }
 0x78d   : > { %v3729_v37 = vpop.f32.mrb[18].mxu0 }
 0x78e   : > { %v4513_v7 = vpack.i.bf16 %v3729_v37, %v3592_v28  ;;  %v4354_v39 = vpop.f32.mrb[19].mxu0 }
 0x790   : > { %4514 = vrot.lane.b32.xlu0 %v4513_v7, %s4791_s24 }
 0x802   : > { %v4515_v46 = vpop.permute.xlu0 %4514 }
 0x803   : > { %v4517_v51 = vunpack.i.h.bf16 %v4515_v46  ;;  %v4516_v40 = vunpack.i.l.bf16 %v4515_v46 }
 0x805   : > { %v3749_v15 = vsel %vm3748_vm6, %v3747_v21, %v4516_v40  ;;  %v3764_v17 = vsel %vm3748_vm6, %v3763_v52, %v4517_v51 }
 0x806   : > { %v4370_v18 = vpack.c.bf16 %v3764_v17, %v3749_v15 }
 0x808   : > { %4371 = vmatprep.subr.bf16.mxu1 %v4370_v18 }
 0x809   : > { %4373 = vmatpush3.bf16.msra.mxu1 %v4370_v18 }
 0x80c   : > { %4360 = vmatmul.mubr.msk.f32.vlgmr.msra.gmra.mrb[32].mxu1 %vm332_vm0, %v3766_v54 }
 0x8df   : > { %v4361_v23 = vpop.f32.mrb[32].mxu1 }
 0x8e0   : > { %3849 = vst [vmem:[%s325_s12 + $0x8] sm:$0xff] %v4361_v23  ;;  %v3839_v25 = vpop.f32.mrb[33].mxu1 }
 0x8e1   : > { %3848 = vst [vmem:[%s325_s12] sm:$0xff] %v3839_v25 }
 0x8e2   : > { %4715 = shalt.err (!%p4712_p3)
}
 0x8e3   : > { %s4716_s11 = scalar_lea.hbm %s5481_s2, 256  ;;  %s4720_s26 = scalar_lea.hbm %s5530_s5, 512 }
 0x8e4   : > { %p4717_p9 = scmp.ne.s32.totalorder %s5481_s2, %s4716_s11  ;;  %p4721_p7 = scmp.lt.u32.totalorder %s5481_s2, %s5530_s5 }
 0x8e5   : > { %p4722_p12 = scmp.lt.u32.totalorder %s4720_s26, %s4716_s11  ;;  %p4724_p2 = scmp.lt.u32.totalorder %s4716_s11, %s5481_s2 }
 0x8e6   : > { %p4718_p13 = pnand %p4717_p9, %p4987_p5 }
 0x8e7   : > { %p4723_p1 = por %p4722_p12, %p4721_p7 }
 0x8e8   : > { %p4719_p11 = pneg %p4718_p13 }
 0x8e9   : > { %p4725_p4 = por %p4724_p2, %p4723_p1 }
 0x8eb   : > { %p4726_p0 = pnand %p4725_p4, %p4719_p11 }
 0x8ed   : > { %4729 = shalt.err (!%p4726_p0)
}
 0x8ee   : > { %s4801_s24 = smov 128   ;;  %s4802_s27 = smov 8  }
 0x8ef   : > { %4422 = dma.vmem_to_hbm [thread:$0]  (%p4987_p5), %s5476_s15, 256, %s5481_s2, %s3851_s8, %s4801_s24, %s4801_s24, %s4802_s27  }
 0x8f0 PF: > { %s3879_s29 = sand.u32 1, %s4768_s18   ;;  %p5562_p8 = scmp.ne.s32.totalorder %s5543_s25, 0 }
 0x8f1   : > { %p5563_p6 = scmp.ge.s32.totalorder %s4780_s21, 2  ;;  %s3880_s12 = scalar_lea.sflag [#allocation4], %s3879_s29 }
 0x8f3   : > { %p4442_p10 = pnand %p5563_p6, %p5562_p8 }
 0x8f5   : > { %4763 = dma.done.wait (!%p4442_p10), %s3880_s12, 256  }
 0x8f6   : > { %4765 = vsyncadd (!%p4442_p10), %s3880_s12, 4294967040  ;;  %p22_p3 = scmp.ge.s32.totalorder %s4973_s14, 4   ;;  %s5564_s18 = smov %s4772_s19 }
 0x8f7   : > { %s5565_s19 = smov %s4776_s20  ;;  %s5566_s20 = smov %s4983_s30 }
 0x8f8   : > { %s5567_s21 = smov %s4973_s14  ;;  %24 = sbr.rel (!%p22_p3) target bundleno = 13 (0xd), region = 110 }
 0x8ff   :  { %3885 = vsyncpa [#allocation3], 1 }
 0x900   :  { %3887 = vsyncpa [#allocation3 + $0x1], 1 }
 0x901   :  { %3888 = vsyncpa [#allocation6], 1 }
 0x902   :  { %3890 = vsyncpa [#allocation6 + $0x1], 1 }
 0x903   :  { %3891 = vsyncpa [#allocation9], 1 }
 0x904   :  { %3892 = vsyncpa [#allocation4], 1 }
 0x905   :  { %3894 = vsyncpa [#allocation4 + $0x1], 1 }

</bundles_post_ra>
